<compile_context>
chip_gen: v5e
topology: v5e:2x2
jax: 0.10.0
libtpu: 0.0.40
codegen_flags: <defaults>
</compile_context>

<pallas_src>
import jax
import jax.numpy as jnp
from jax import lax
from jax.experimental import pallas as pl
from jax.experimental.pallas import tpu as pltpu

EPS = 1e-5  # ChannelLayerNorm eps (torch LayerNorm default)


def _round_up(x, m):
    return ((x + m - 1) // m) * m


def _cdiv(a, b):
    return -(-a // b)


def _make_prenet_kernel(H: int, K: int, pad: int):
    """H = true hidden channel count (pre-padding), K = kernel size (odd)."""

    def kernel(x_ref, m_ref, w1_ref, w23_ref, vecs_ref, wp_ref, bp_ref, o_ref):
        x = x_ref[...]                       # (Rb, Cp) f32  -- residual
        m = m_ref[...]                       # (Rb, 1)  f32  -- sequence mask
        rb = x.shape[0]
        vecs = vecs_ref[...]                 # (9, Hp) f32: b1,g1,be1,b2,g2,be2,b3,g3,be3
        inv_h = jnp.float32(1.0 / H)

        def conv_ln_relu(h, weight_at, b, g, beta):
            # one mask multiply + one bf16 cast per layer (hoisted out of K loop)
            hm = (h * m).astype(jnp.bfloat16)
            # centre tap initialises the accumulator; bias folded into the same add
            acc = jnp.dot(hm, weight_at(pad),
                          preferred_element_type=jnp.float32) + b
            for k in range(K):               # K small & static -> unrolled MXU matmuls
                if k == pad:
                    continue
                d = k - pad
                z = jnp.dot(hm, weight_at(k), preferred_element_type=jnp.float32)
                # acc[t] += z[t + d]; rows wrapped by the circular roll only land
                # in halo / padded rows that are discarded, so no edge masking.
                acc = acc + pltpu.roll(z, shift=(-d) % rb, axis=0)
            # one-pass ChannelLayerNorm over the true H channels (padded channels
            # of acc are exactly zero thanks to zero-padded weights & bias).
            mean = jnp.sum(acc, axis=-1, keepdims=True) * inv_h
            ex2 = jnp.sum(acc * acc, axis=-1, keepdims=True) * inv_h
            var = jnp.maximum(ex2 - mean * mean, 0.0)
            yn = (acc - mean) * lax.rsqrt(var + EPS) * g + beta
            return jnp.maximum(yn, 0.0)      # relu

        h = conv_ln_relu(x, lambda k: w1_ref[k], vecs[0:1], vecs[1:2], vecs[2:3])
        h = conv_ln_relu(h, lambda k: w23_ref[0, k], vecs[3:4], vecs[4:5], vecs[5:6])
        h = conv_ln_relu(h, lambda k: w23_ref[1, k], vecs[6:7], vecs[7:8], vecs[8:9])
        # TODO(synk): dropout between layers skipped (eval / p_dropout = 0).

        # proj: 1x1 conv + bias, then residual add (all f32)
        out = jnp.dot(h.astype(jnp.bfloat16), wp_ref[...],
                      preferred_element_type=jnp.float32) + bp_ref[...] + x
        o_ref[...] = out.astype(o_ref.dtype)

    return kernel


def _choose_tiling(B, T, Cp, Hp, pad):
    halo = 3 * pad                       # receptive field of the 3 stacked convs
    T_TILE_MAX = 512
    t_tile = T if T <= T_TILE_MAX else T_TILE_MAX
    num_t = _cdiv(T, t_tile)
    tseg = t_tile + 2 * halo
    tseg_p = _round_up(tseg, 8)          # sublane-aligned segment length
    n_seg = B * num_t
    # rows-per-step target: fill the MXU M dim while staying well inside VMEM
    bytes_per_row = 4 * (4 * Cp + 8 * max(Cp, Hp))   # x/out dbl-buffered + f32 temps
    rows_cap = max(tseg_p, (24 * 2 ** 20) // bytes_per_row)
    target_rows = min(1024, rows_cap)
    gseg = max(1, min(target_rows // tseg_p, n_seg))
    if n_seg >= 2:                       # keep >= 2 grid steps (both v7x TCs fed)
        gseg = min(gseg, _cdiv(n_seg, 2))
    n_blocks = _cdiv(n_seg, gseg)
    return halo, t_tile, num_t, tseg, tseg_p, gseg, n_blocks


def prenet_forward(seq, mask, params):
    """seq: (B, Cin, T), mask: (B, 1, T)  ->  (B, Cin, T)   (PyTorch layout)."""
    B, Cin, T = seq.shape
    H, _, K = params["conv1_w"].shape
    assert K % 2 == 1, "kernel_size must be odd (module asserts the same)"
    pad = (K - 1) // 2

    Cp = _round_up(Cin, 128)             # lane-dense channel padding
    Hp = _round_up(H, 128)
    halo, t_tile, num_t, tseg, tseg_p, gseg, n_blocks = _choose_tiling(B, T, Cp, Hp, pad)
    n_seg = B * num_t
    s_pad = n_blocks * gseg              # segment count padded to a multiple of gseg
    rb = gseg * tseg_p                   # rows per grid step (matmul M)

    f32 = jnp.float32
    x = jnp.transpose(seq, (0, 2, 1)).astype(f32)          # (B, T, Cin)
    m = jnp.transpose(mask, (0, 2, 1)).astype(f32)         # (B, T, 1)
    # zero-pad channels + time (halo on the left, halo + tile-rounding on the right)
    Lp = num_t * t_tile + 2 * halo
    x = jnp.pad(x, ((0, 0), (halo, Lp - halo - T), (0, Cp - Cin)))   # (B, Lp, Cp)
    m = jnp.pad(m, ((0, 0), (halo, Lp - halo - T), (0, 0)))          # (B, Lp, 1)

    # overlapping segments: segment s covers padded-time rows [s*t_tile, s*t_tile+tseg)
    idx = jnp.arange(num_t)[:, None] * t_tile + jnp.arange(tseg)[None, :]
    xs = jnp.pad(x[:, idx, :], ((0, 0), (0, 0), (0, tseg_p - tseg), (0, 0)))
    ms = jnp.pad(m[:, idx, :], ((0, 0), (0, 0), (0, tseg_p - tseg), (0, 0)))
    xs = xs.reshape(n_seg, tseg_p, Cp)
    ms = ms.reshape(n_seg, tseg_p, 1)
    if s_pad > n_seg:                    # dummy (all-zero) segments, discarded later
        xs = jnp.pad(xs, ((0, s_pad - n_seg), (0, 0), (0, 0)))
        ms = jnp.pad(ms, ((0, s_pad - n_seg), (0, 0), (0, 0)))
    xs = xs.reshape(s_pad * tseg_p, Cp)
    ms = ms.reshape(s_pad * tseg_p, 1)

    def conv_w(w_pt, ci_p, co_p):        # (O, I, K) -> (K, I_pad, O_pad) bf16
        w = jnp.transpose(w_pt, (2, 1, 0)).astype(f32)
        w = jnp.pad(w, ((0, 0), (0, ci_p - w.shape[1]), (0, co_p - w.shape[2])))
        return w.astype(jnp.bfloat16)

    def row(v, width):                   # (C,) -> (width,) f32, zero-padded
        return jnp.pad(v.astype(f32), (0, width - v.shape[0]))

    w1 = conv_w(params["conv1_w"], Cp, Hp)                          # (K, Cp, Hp)
    w23 = jnp.stack([conv_w(params["conv2_w"], Hp, Hp),
                     conv_w(params["conv3_w"], Hp, Hp)], axis=0)    # (2, K, Hp, Hp)
    vecs = jnp.stack([
        row(params["conv1_b"], Hp), row(params["g1"], Hp), row(params["be1"], Hp),
        row(params["conv2_b"], Hp), row(params["g2"], Hp), row(params["be2"], Hp),
        row(params["conv3_b"], Hp), row(params["g3"], Hp), row(params["be3"], Hp),
    ], axis=0)                                                      # (9, Hp) f32
    wp = jnp.transpose(params["proj_w"][:, :, 0], (1, 0)).astype(f32)  # (H, Cin)
    wp = jnp.pad(wp, ((0, Hp - H), (0, Cp - Cin))).astype(jnp.bfloat16)
    bp = row(params["proj_b"], Cp).reshape(1, Cp)                   # (1, Cp) f32
    weights = (w1, w23, vecs, wp, bp)

    def full_spec(a):                    # whole (small) weight resident every step
        n = a.ndim
        return pl.BlockSpec(a.shape, lambda i, _n=n: (0,) * _n)

    in_specs = [
        pl.BlockSpec((rb, Cp), lambda i: (i, 0)),    # activation rows (per block)
        pl.BlockSpec((rb, 1), lambda i: (i, 0)),     # mask rows
    ] + [full_spec(a) for a in weights]

    rows_total = s_pad * tseg_p
    w_bytes = int(w1.size * 2 + w23.size * 2 + wp.size * 2 + vecs.size * 4 + bp.size * 4)
    cost = pl.CostEstimate(
        flops=int(rows_total * 2 * (K * Cp * Hp + 2 * K * Hp * Hp + Hp * Cp)),
        transcendentals=int(rows_total * 3),
        bytes_accessed=int((xs.size + ms.size + rows_total * Cp) * 4 + w_bytes))

    vmem_est = (4 * rb * (2 * Cp + 1) * 2      # x/out (+mask) tiles, double-buffered
                + 2 * w_bytes                  # resident weights, double-buffered
                + 8 * rb * max(Cp, Hp) * 4)    # live f32 temporaries
    vmem_limit = int(min(max(2 * vmem_est, 32 * 2 ** 20), 64 * 2 ** 20))

    out = pl.pallas_call(
        _make_prenet_kernel(H, K, pad),
        out_shape=jax.ShapeDtypeStruct((rows_total, Cp), f32),
        grid=(n_blocks,),
        in_specs=in_specs,
        out_specs=pl.BlockSpec((rb, Cp), lambda i: (i, 0)),
        compiler_params=pltpu.CompilerParams(
            dimension_semantics=("parallel",),
            vmem_limit_bytes=vmem_limit),
        cost_estimate=cost,
    )(xs, ms, *weights)

    # drop halos / padding and return in PyTorch (B, Cin, T) layout
    out = out.reshape(s_pad, tseg_p, Cp)[:n_seg, halo:halo + t_tile, :Cin]
    out = out.reshape(B, num_t * t_tile, Cin)[:, :T, :]
    return jnp.transpose(out, (0, 2, 1)).astype(seq.dtype)


# ---------------- plain-JAX reference (for correctness check) ----------------
def ref_forward(seq, mask, params):
    def conv1d(x, w_pt, b_pt):  # x: (B,C,T), w_pt: (O,I,K)
        pad = (w_pt.shape[2] - 1) // 2
        y = lax.conv_general_dilated(
            x, w_pt, window_strides=(1,), padding=[(pad, pad)],
            dimension_numbers=("NCH", "OIH", "NCH"))
        return y + b_pt[None, :, None]

    def chan_ln(x, g, b):
        mean = jnp.mean(x, axis=1, keepdims=True)
        var = jnp.mean((x - mean) ** 2, axis=1, keepdims=True)
        return ((x - mean) * lax.rsqrt(var + EPS)) * g[None, :, None] \
            + b[None, :, None]

    residual = seq
    h = conv1d(seq * mask, params["conv1_w"], params["conv1_b"])
    h = jnp.maximum(chan_ln(h, params["g1"], params["be1"]), 0.0)
    h = conv1d(h * mask, params["conv2_w"], params["conv2_b"])
    h = jnp.maximum(chan_ln(h, params["g2"], params["be2"]), 0.0)
    h = conv1d(h * mask, params["conv3_w"], params["conv3_b"])
    h = jnp.maximum(chan_ln(h, params["g3"], params["be3"]), 0.0)
    h = conv1d(h, params["proj_w"], params["proj_b"])
    return h + residual


def init_params(key, in_channels, hidden_channels, kernel_size):
    ks = jax.random.split(key, 8)
    s = 0.1
    return {
        "conv1_w": s * jax.random.normal(
            ks[0], (hidden_channels, in_channels, kernel_size), jnp.float32),
        "conv1_b": s * jax.random.normal(ks[1], (hidden_channels,), jnp.float32),
        "conv2_w": s * jax.random.normal(
            ks[2], (hidden_channels, hidden_channels, kernel_size), jnp.float32),
        "conv2_b": s * jax.random.normal(ks[3], (hidden_channels,), jnp.float32),
        "conv3_w": s * jax.random.normal(
            ks[4], (hidden_channels, hidden_channels, kernel_size), jnp.float32),
        "conv3_b": s * jax.random.normal(ks[5], (hidden_channels,), jnp.float32),
        "g1": jnp.ones((hidden_channels,), jnp.float32),
        "be1": jnp.zeros((hidden_channels,), jnp.float32),
        "g2": jnp.ones((hidden_channels,), jnp.float32),
        "be2": jnp.zeros((hidden_channels,), jnp.float32),
        "g3": jnp.ones((hidden_channels,), jnp.float32),
        "be3": jnp.zeros((hidden_channels,), jnp.float32),
        # The module zero-inits proj; use small nonzero weights so the conv/LN
        # path actually contributes to the compared output.
        "proj_w": s * jax.random.normal(
            ks[6], (in_channels, hidden_channels, 1), jnp.float32),
        "proj_b": s * jax.random.normal(ks[7], (in_channels,), jnp.float32),
    }


if __name__ == "__main__":
    B, Cin, H, T, K = 2, 8, 32, 16, 3

    key = jax.random.PRNGKey(0)
    k_seq, k_par = jax.random.split(key)
    seq = jax.random.normal(k_seq, (B, Cin, T), jnp.float32)
    # valid-length mask: batch 0 fully valid, batch 1 valid for first 10 frames
    lens = jnp.array([T, 10])
    mask = (jnp.arange(T)[None, None, :] < lens[:, None, None]).astype(jnp.float32)

    params = init_params(k_par, Cin, H, K)

    out = jax.block_until_ready(prenet_forward(seq, mask, params))
    ref = ref_forward(seq, mask, params)

    assert out.shape == (B, Cin, T)
    # bf16 MXU operands (f32 accumulation) -> loosened tolerance vs f32 reference.
    assert jnp.allclose(out, ref, rtol=2e-2, atol=1e-1), "mismatch vs reference"

    print("KERNEL_OK")
</pallas_src>

<mosaic_0001>
module attributes {stable_mosaic.version = 11 : i64} {
  func.func @kernel(%arg0: i32, %arg1: memref<24x128xf32, #tpu.memory_space<vmem>>, %arg2: memref<24x1xf32, #tpu.memory_space<vmem>>, %arg3: memref<3x128x128xbf16, #tpu.memory_space<vmem>>, %arg4: memref<2x3x128x128xbf16, #tpu.memory_space<vmem>>, %arg5: memref<9x128xf32, #tpu.memory_space<vmem>>, %arg6: memref<128x128xbf16, #tpu.memory_space<vmem>>, %arg7: memref<1x128xf32, #tpu.memory_space<vmem>>, %arg8: memref<24x128xf32, #tpu.memory_space<vmem>>) attributes {dimension_semantics = [#tpu.dimension_semantics<parallel>], iteration_bounds = array<i64: 2>, scalar_prefetch = 0 : i64, scratch_operands = 0 : i64, tpu.core_type = #tpu.core_type<tc>, window_params = [{transform_indices = @transform_0, window_bounds = array<i64: 24, 128>}, {transform_indices = @transform_1, window_bounds = array<i64: 24, 1>}, {pipeline_mode = #tpu.pipeline_mode<synchronous>, transform_indices = @transform_2, window_bounds = array<i64: 3, 128, 128>}, {pipeline_mode = #tpu.pipeline_mode<synchronous>, transform_indices = @transform_3, window_bounds = array<i64: 2, 3, 128, 128>}, {pipeline_mode = #tpu.pipeline_mode<synchronous>, transform_indices = @transform_4, window_bounds = array<i64: 9, 128>}, {pipeline_mode = #tpu.pipeline_mode<synchronous>, transform_indices = @transform_5, window_bounds = array<i64: 128, 128>}, {pipeline_mode = #tpu.pipeline_mode<synchronous>, transform_indices = @transform_6, window_bounds = array<i64: 1, 128>}, {transform_indices = @transform_7, window_bounds = array<i64: 24, 128>}]} {
    %c0 = arith.constant 0 : index
    %c0_0 = arith.constant 0 : index
    %0 = vector.load %arg1[%c0, %c0_0] : memref<24x128xf32, #tpu.memory_space<vmem>>, vector<24x128xf32>
    %c0_1 = arith.constant 0 : index
    %c0_2 = arith.constant 0 : index
    %1 = vector.load %arg2[%c0_1, %c0_2] : memref<24x1xf32, #tpu.memory_space<vmem>>, vector<24x1xf32>
    %c0_3 = arith.constant 0 : index
    %c0_4 = arith.constant 0 : index
    %2 = vector.load %arg5[%c0_3, %c0_4] : memref<9x128xf32, #tpu.memory_space<vmem>>, vector<9x128xf32>
    %3 = vector.extract_strided_slice %2 {offsets = [0, 0], sizes = [1, 128], strides = [1, 1]} : vector<9x128xf32> to vector<1x128xf32>
    %4 = vector.extract_strided_slice %2 {offsets = [1, 0], sizes = [1, 128], strides = [1, 1]} : vector<9x128xf32> to vector<1x128xf32>
    %5 = vector.extract_strided_slice %2 {offsets = [2, 0], sizes = [1, 128], strides = [1, 1]} : vector<9x128xf32> to vector<1x128xf32>
    %6 = vector.broadcast %1 : vector<24x1xf32> to vector<24x128xf32>
    %7 = arith.mulf %0, %6 : vector<24x128xf32>
    %8 = arith.truncf %7 : vector<24x128xf32> to vector<24x128xbf16>
    %c1 = arith.constant 1 : index
    %c0_5 = arith.constant 0 : index
    %c0_6 = arith.constant 0 : index
    %9 = vector.load %arg3[%c1, %c0_5, %c0_6] : memref<3x128x128xbf16, #tpu.memory_space<vmem>>, vector<1x128x128xbf16>
    %10 = vector.shape_cast %9 : vector<1x128x128xbf16> to vector<128x128xbf16>
    %cst = arith.constant dense<0.000000e+00> : vector<24x128xf32>
    %11 = tpu.matmul %8, %10, %cst {dimension_numbers = #tpu.dot_dimension_numbers<[1], [0], [0], [1], [0, 0, 1, 1], [], []>} : vector<24x128xbf16>, vector<128x128xbf16>, vector<24x128xf32> -> vector<24x128xf32>
    %12 = vector.broadcast %3 : vector<1x128xf32> to vector<24x128xf32>
    %13 = arith.addf %11, %12 : vector<24x128xf32>
    %c0_7 = arith.constant 0 : index
    %c0_8 = arith.constant 0 : index
    %c0_9 = arith.constant 0 : index
    %14 = vector.load %arg3[%c0_7, %c0_8, %c0_9] : memref<3x128x128xbf16, #tpu.memory_space<vmem>>, vector<1x128x128xbf16>
    %15 = vector.shape_cast %14 : vector<1x128x128xbf16> to vector<128x128xbf16>
    %cst_10 = arith.constant dense<0.000000e+00> : vector<24x128xf32>
    %16 = tpu.matmul %8, %15, %cst_10 {dimension_numbers = #tpu.dot_dimension_numbers<[1], [0], [0], [1], [0, 0, 1, 1], [], []>} : vector<24x128xbf16>, vector<128x128xbf16>, vector<24x128xf32> -> vector<24x128xf32>
    %c1_i32 = arith.constant 1 : i32
    %17 = tpu.dynamic_rotate %16 by %c1_i32 dim 0 : vector<24x128xf32>, i32 -> vector<24x128xf32>
    %18 = arith.addf %13, %17 : vector<24x128xf32>
    %c2 = arith.constant 2 : index
    %c0_11 = arith.constant 0 : index
    %c0_12 = arith.constant 0 : index
    %19 = vector.load %arg3[%c2, %c0_11, %c0_12] : memref<3x128x128xbf16, #tpu.memory_space<vmem>>, vector<1x128x128xbf16>
    %20 = vector.shape_cast %19 : vector<1x128x128xbf16> to vector<128x128xbf16>
    %cst_13 = arith.constant dense<0.000000e+00> : vector<24x128xf32>
    %21 = tpu.matmul %8, %20, %cst_13 {dimension_numbers = #tpu.dot_dimension_numbers<[1], [0], [0], [1], [0, 0, 1, 1], [], []>} : vector<24x128xbf16>, vector<128x128xbf16>, vector<24x128xf32> -> vector<24x128xf32>
    %c23_i32 = arith.constant 23 : i32
    %22 = tpu.dynamic_rotate %21 by %c23_i32 dim 0 : vector<24x128xf32>, i32 -> vector<24x128xf32>
    %23 = arith.addf %18, %22 : vector<24x128xf32>
    %cst_14 = arith.constant dense<0.000000e+00> : vector<24xf32>
    %24 = vector.multi_reduction <add>, %23, %cst_14 [1] : vector<24x128xf32> to vector<24xf32>
    %25 = vector.shape_cast %24 : vector<24xf32> to vector<24x1xf32>
    %cst_15 = arith.constant 3.125000e-02 : f32
    %26 = vector.broadcast %cst_15 : f32 to vector<24x1xf32>
    %27 = arith.mulf %25, %26 : vector<24x1xf32>
    %28 = arith.mulf %23, %23 : vector<24x128xf32>
    %cst_16 = arith.constant dense<0.000000e+00> : vector<24xf32>
    %29 = vector.multi_reduction <add>, %28, %cst_16 [1] : vector<24x128xf32> to vector<24xf32>
    %30 = vector.shape_cast %29 : vector<24xf32> to vector<24x1xf32>
    %cst_17 = arith.constant 3.125000e-02 : f32
    %31 = vector.broadcast %cst_17 : f32 to vector<24x1xf32>
    %32 = arith.mulf %30, %31 : vector<24x1xf32>
    %33 = arith.mulf %27, %27 : vector<24x1xf32>
    %34 = arith.subf %32, %33 : vector<24x1xf32>
    %cst_18 = arith.constant 0.000000e+00 : f32
    %35 = vector.broadcast %cst_18 : f32 to vector<24x1xf32>
    %36 = arith.maximumf %34, %35 : vector<24x1xf32>
    %37 = vector.broadcast %27 : vector<24x1xf32> to vector<24x128xf32>
    %38 = arith.subf %23, %37 : vector<24x128xf32>
    %cst_19 = arith.constant 9.99999974E-6 : f32
    %39 = vector.broadcast %cst_19 : f32 to vector<24x1xf32>
    %40 = arith.addf %36, %39 : vector<24x1xf32>
    %41 = math.rsqrt %40 : vector<24x1xf32>
    %42 = vector.broadcast %41 : vector<24x1xf32> to vector<24x128xf32>
    %43 = arith.mulf %38, %42 : vector<24x128xf32>
    %44 = vector.broadcast %4 : vector<1x128xf32> to vector<24x128xf32>
    %45 = arith.mulf %43, %44 : vector<24x128xf32>
    %46 = vector.broadcast %5 : vector<1x128xf32> to vector<24x128xf32>
    %47 = arith.addf %45, %46 : vector<24x128xf32>
    %cst_20 = arith.constant 0.000000e+00 : f32
    %48 = vector.broadcast %cst_20 : f32 to vector<24x128xf32>
    %49 = arith.maximumf %47, %48 : vector<24x128xf32>
    %50 = vector.extract_strided_slice %2 {offsets = [3, 0], sizes = [1, 128], strides = [1, 1]} : vector<9x128xf32> to vector<1x128xf32>
    %51 = vector.extract_strided_slice %2 {offsets = [4, 0], sizes = [1, 128], strides = [1, 1]} : vector<9x128xf32> to vector<1x128xf32>
    %52 = vector.extract_strided_slice %2 {offsets = [5, 0], sizes = [1, 128], strides = [1, 1]} : vector<9x128xf32> to vector<1x128xf32>
    %53 = vector.broadcast %1 : vector<24x1xf32> to vector<24x128xf32>
    %54 = arith.mulf %49, %53 : vector<24x128xf32>
    %55 = arith.truncf %54 : vector<24x128xf32> to vector<24x128xbf16>
    %c0_21 = arith.constant 0 : index
    %c1_22 = arith.constant 1 : index
    %c0_23 = arith.constant 0 : index
    %c0_24 = arith.constant 0 : index
    %56 = vector.load %arg4[%c0_21, %c1_22, %c0_23, %c0_24] : memref<2x3x128x128xbf16, #tpu.memory_space<vmem>>, vector<1x1x128x128xbf16>
    %57 = vector.shape_cast %56 : vector<1x1x128x128xbf16> to vector<128x128xbf16>
    %cst_25 = arith.constant dense<0.000000e+00> : vector<24x128xf32>
    %58 = tpu.matmul %55, %57, %cst_25 {dimension_numbers = #tpu.dot_dimension_numbers<[1], [0], [0], [1], [0, 0, 1, 1], [], []>} : vector<24x128xbf16>, vector<128x128xbf16>, vector<24x128xf32> -> vector<24x128xf32>
    %59 = vector.broadcast %50 : vector<1x128xf32> to vector<24x128xf32>
    %60 = arith.addf %58, %59 : vector<24x128xf32>
    %c0_26 = arith.constant 0 : index
    %c0_27 = arith.constant 0 : index
    %c0_28 = arith.constant 0 : index
    %c0_29 = arith.constant 0 : index
    %61 = vector.load %arg4[%c0_26, %c0_27, %c0_28, %c0_29] : memref<2x3x128x128xbf16, #tpu.memory_space<vmem>>, vector<1x1x128x128xbf16>
    %62 = vector.shape_cast %61 : vector<1x1x128x128xbf16> to vector<128x128xbf16>
    %cst_30 = arith.constant dense<0.000000e+00> : vector<24x128xf32>
    %63 = tpu.matmul %55, %62, %cst_30 {dimension_numbers = #tpu.dot_dimension_numbers<[1], [0], [0], [1], [0, 0, 1, 1], [], []>} : vector<24x128xbf16>, vector<128x128xbf16>, vector<24x128xf32> -> vector<24x128xf32>
    %c1_i32_31 = arith.constant 1 : i32
    %64 = tpu.dynamic_rotate %63 by %c1_i32_31 dim 0 : vector<24x128xf32>, i32 -> vector<24x128xf32>
    %65 = arith.addf %60, %64 : vector<24x128xf32>
    %c0_32 = arith.constant 0 : index
    %c2_33 = arith.constant 2 : index
    %c0_34 = arith.constant 0 : index
    %c0_35 = arith.constant 0 : index
    %66 = vector.load %arg4[%c0_32, %c2_33, %c0_34, %c0_35] : memref<2x3x128x128xbf16, #tpu.memory_space<vmem>>, vector<1x1x128x128xbf16>
    %67 = vector.shape_cast %66 : vector<1x1x128x128xbf16> to vector<128x128xbf16>
    %cst_36 = arith.constant dense<0.000000e+00> : vector<24x128xf32>
    %68 = tpu.matmul %55, %67, %cst_36 {dimension_numbers = #tpu.dot_dimension_numbers<[1], [0], [0], [1], [0, 0, 1, 1], [], []>} : vector<24x128xbf16>, vector<128x128xbf16>, vector<24x128xf32> -> vector<24x128xf32>
    %c23_i32_37 = arith.constant 23 : i32
    %69 = tpu.dynamic_rotate %68 by %c23_i32_37 dim 0 : vector<24x128xf32>, i32 -> vector<24x128xf32>
    %70 = arith.addf %65, %69 : vector<24x128xf32>
    %cst_38 = arith.constant dense<0.000000e+00> : vector<24xf32>
    %71 = vector.multi_reduction <add>, %70, %cst_38 [1] : vector<24x128xf32> to vector<24xf32>
    %72 = vector.shape_cast %71 : vector<24xf32> to vector<24x1xf32>
    %cst_39 = arith.constant 3.125000e-02 : f32
    %73 = vector.broadcast %cst_39 : f32 to vector<24x1xf32>
    %74 = arith.mulf %72, %73 : vector<24x1xf32>
    %75 = arith.mulf %70, %70 : vector<24x128xf32>
    %cst_40 = arith.constant dense<0.000000e+00> : vector<24xf32>
    %76 = vector.multi_reduction <add>, %75, %cst_40 [1] : vector<24x128xf32> to vector<24xf32>
    %77 = vector.shape_cast %76 : vector<24xf32> to vector<24x1xf32>
    %cst_41 = arith.constant 3.125000e-02 : f32
    %78 = vector.broadcast %cst_41 : f32 to vector<24x1xf32>
    %79 = arith.mulf %77, %78 : vector<24x1xf32>
    %80 = arith.mulf %74, %74 : vector<24x1xf32>
    %81 = arith.subf %79, %80 : vector<24x1xf32>
    %cst_42 = arith.constant 0.000000e+00 : f32
    %82 = vector.broadcast %cst_42 : f32 to vector<24x1xf32>
    %83 = arith.maximumf %81, %82 : vector<24x1xf32>
    %84 = vector.broadcast %74 : vector<24x1xf32> to vector<24x128xf32>
    %85 = arith.subf %70, %84 : vector<24x128xf32>
    %cst_43 = arith.constant 9.99999974E-6 : f32
    %86 = vector.broadcast %cst_43 : f32 to vector<24x1xf32>
    %87 = arith.addf %83, %86 : vector<24x1xf32>
    %88 = math.rsqrt %87 : vector<24x1xf32>
    %89 = vector.broadcast %88 : vector<24x1xf32> to vector<24x128xf32>
    %90 = arith.mulf %85, %89 : vector<24x128xf32>
    %91 = vector.broadcast %51 : vector<1x128xf32> to vector<24x128xf32>
    %92 = arith.mulf %90, %91 : vector<24x128xf32>
    %93 = vector.broadcast %52 : vector<1x128xf32> to vector<24x128xf32>
    %94 = arith.addf %92, %93 : vector<24x128xf32>
    %cst_44 = arith.constant 0.000000e+00 : f32
    %95 = vector.broadcast %cst_44 : f32 to vector<24x128xf32>
    %96 = arith.maximumf %94, %95 : vector<24x128xf32>
    %97 = vector.extract_strided_slice %2 {offsets = [6, 0], sizes = [1, 128], strides = [1, 1]} : vector<9x128xf32> to vector<1x128xf32>
    %98 = vector.extract_strided_slice %2 {offsets = [7, 0], sizes = [1, 128], strides = [1, 1]} : vector<9x128xf32> to vector<1x128xf32>
    %99 = vector.extract_strided_slice %2 {offsets = [8, 0], sizes = [1, 128], strides = [1, 1]} : vector<9x128xf32> to vector<1x128xf32>
    %100 = vector.broadcast %1 : vector<24x1xf32> to vector<24x128xf32>
    %101 = arith.mulf %96, %100 : vector<24x128xf32>
    %102 = arith.truncf %101 : vector<24x128xf32> to vector<24x128xbf16>
    %c1_45 = arith.constant 1 : index
    %c1_46 = arith.constant 1 : index
    %c0_47 = arith.constant 0 : index
    %c0_48 = arith.constant 0 : index
    %103 = vector.load %arg4[%c1_45, %c1_46, %c0_47, %c0_48] : memref<2x3x128x128xbf16, #tpu.memory_space<vmem>>, vector<1x1x128x128xbf16>
    %104 = vector.shape_cast %103 : vector<1x1x128x128xbf16> to vector<128x128xbf16>
    %cst_49 = arith.constant dense<0.000000e+00> : vector<24x128xf32>
    %105 = tpu.matmul %102, %104, %cst_49 {dimension_numbers = #tpu.dot_dimension_numbers<[1], [0], [0], [1], [0, 0, 1, 1], [], []>} : vector<24x128xbf16>, vector<128x128xbf16>, vector<24x128xf32> -> vector<24x128xf32>
    %106 = vector.broadcast %97 : vector<1x128xf32> to vector<24x128xf32>
    %107 = arith.addf %105, %106 : vector<24x128xf32>
    %c1_50 = arith.constant 1 : index
    %c0_51 = arith.constant 0 : index
    %c0_52 = arith.constant 0 : index
    %c0_53 = arith.constant 0 : index
    %108 = vector.load %arg4[%c1_50, %c0_51, %c0_52, %c0_53] : memref<2x3x128x128xbf16, #tpu.memory_space<vmem>>, vector<1x1x128x128xbf16>
    %109 = vector.shape_cast %108 : vector<1x1x128x128xbf16> to vector<128x128xbf16>
    %cst_54 = arith.constant dense<0.000000e+00> : vector<24x128xf32>
    %110 = tpu.matmul %102, %109, %cst_54 {dimension_numbers = #tpu.dot_dimension_numbers<[1], [0], [0], [1], [0, 0, 1, 1], [], []>} : vector<24x128xbf16>, vector<128x128xbf16>, vector<24x128xf32> -> vector<24x128xf32>
    %c1_i32_55 = arith.constant 1 : i32
    %111 = tpu.dynamic_rotate %110 by %c1_i32_55 dim 0 : vector<24x128xf32>, i32 -> vector<24x128xf32>
    %112 = arith.addf %107, %111 : vector<24x128xf32>
    %c1_56 = arith.constant 1 : index
    %c2_57 = arith.constant 2 : index
    %c0_58 = arith.constant 0 : index
    %c0_59 = arith.constant 0 : index
    %113 = vector.load %arg4[%c1_56, %c2_57, %c0_58, %c0_59] : memref<2x3x128x128xbf16, #tpu.memory_space<vmem>>, vector<1x1x128x128xbf16>
    %114 = vector.shape_cast %113 : vector<1x1x128x128xbf16> to vector<128x128xbf16>
    %cst_60 = arith.constant dense<0.000000e+00> : vector<24x128xf32>
    %115 = tpu.matmul %102, %114, %cst_60 {dimension_numbers = #tpu.dot_dimension_numbers<[1], [0], [0], [1], [0, 0, 1, 1], [], []>} : vector<24x128xbf16>, vector<128x128xbf16>, vector<24x128xf32> -> vector<24x128xf32>
    %c23_i32_61 = arith.constant 23 : i32
    %116 = tpu.dynamic_rotate %115 by %c23_i32_61 dim 0 : vector<24x128xf32>, i32 -> vector<24x128xf32>
    %117 = arith.addf %112, %116 : vector<24x128xf32>
    %cst_62 = arith.constant dense<0.000000e+00> : vector<24xf32>
    %118 = vector.multi_reduction <add>, %117, %cst_62 [1] : vector<24x128xf32> to vector<24xf32>
    %119 = vector.shape_cast %118 : vector<24xf32> to vector<24x1xf32>
    %cst_63 = arith.constant 3.125000e-02 : f32
    %120 = vector.broadcast %cst_63 : f32 to vector<24x1xf32>
    %121 = arith.mulf %119, %120 : vector<24x1xf32>
    %122 = arith.mulf %117, %117 : vector<24x128xf32>
    %cst_64 = arith.constant dense<0.000000e+00> : vector<24xf32>
    %123 = vector.multi_reduction <add>, %122, %cst_64 [1] : vector<24x128xf32> to vector<24xf32>
    %124 = vector.shape_cast %123 : vector<24xf32> to vector<24x1xf32>
    %cst_65 = arith.constant 3.125000e-02 : f32
    %125 = vector.broadcast %cst_65 : f32 to vector<24x1xf32>
    %126 = arith.mulf %124, %125 : vector<24x1xf32>
    %127 = arith.mulf %121, %121 : vector<24x1xf32>
    %128 = arith.subf %126, %127 : vector<24x1xf32>
    %cst_66 = arith.constant 0.000000e+00 : f32
    %129 = vector.broadcast %cst_66 : f32 to vector<24x1xf32>
    %130 = arith.maximumf %128, %129 : vector<24x1xf32>
    %131 = vector.broadcast %121 : vector<24x1xf32> to vector<24x128xf32>
    %132 = arith.subf %117, %131 : vector<24x128xf32>
    %cst_67 = arith.constant 9.99999974E-6 : f32
    %133 = vector.broadcast %cst_67 : f32 to vector<24x1xf32>
    %134 = arith.addf %130, %133 : vector<24x1xf32>
    %135 = math.rsqrt %134 : vector<24x1xf32>
    %136 = vector.broadcast %135 : vector<24x1xf32> to vector<24x128xf32>
    %137 = arith.mulf %132, %136 : vector<24x128xf32>
    %138 = vector.broadcast %98 : vector<1x128xf32> to vector<24x128xf32>
    %139 = arith.mulf %137, %138 : vector<24x128xf32>
    %140 = vector.broadcast %99 : vector<1x128xf32> to vector<24x128xf32>
    %141 = arith.addf %139, %140 : vector<24x128xf32>
    %cst_68 = arith.constant 0.000000e+00 : f32
    %142 = vector.broadcast %cst_68 : f32 to vector<24x128xf32>
    %143 = arith.maximumf %141, %142 : vector<24x128xf32>
    %144 = arith.truncf %143 : vector<24x128xf32> to vector<24x128xbf16>
    %c0_69 = arith.constant 0 : index
    %c0_70 = arith.constant 0 : index
    %145 = vector.load %arg6[%c0_69, %c0_70] : memref<128x128xbf16, #tpu.memory_space<vmem>>, vector<128x128xbf16>
    %cst_71 = arith.constant dense<0.000000e+00> : vector<24x128xf32>
    %146 = tpu.matmul %144, %145, %cst_71 {dimension_numbers = #tpu.dot_dimension_numbers<[1], [0], [0], [1], [0, 0, 1, 1], [], []>} : vector<24x128xbf16>, vector<128x128xbf16>, vector<24x128xf32> -> vector<24x128xf32>
    %c0_72 = arith.constant 0 : index
    %c0_73 = arith.constant 0 : index
    %147 = vector.load %arg7[%c0_72, %c0_73] : memref<1x128xf32, #tpu.memory_space<vmem>>, vector<1x128xf32>
    %148 = vector.broadcast %147 : vector<1x128xf32> to vector<24x128xf32>
    %149 = arith.addf %146, %148 : vector<24x128xf32>
    %150 = arith.addf %149, %0 : vector<24x128xf32>
    %c0_74 = arith.constant 0 : index
    %c0_75 = arith.constant 0 : index
    %151 = vector.load %arg8[%c0_74, %c0_75] : memref<24x128xf32, #tpu.memory_space<vmem>>, vector<24x128xf32>
    tpu.vector_store %arg8[%c0_74, %c0_75], %150 {strides = array<i32>} : memref<24x128xf32, #tpu.memory_space<vmem>>, vector<24x128xf32>,
    return
  }
  func.func @transform_0(%arg0: i32) -> (i32, i32) {
    %c0_i32 = arith.constant 0 : i32
    %c0_i32_0 = arith.constant 0 : i32
    return %arg0, %c0_i32 : i32, i32
  }
  func.func @transform_1(%arg0: i32) -> (i32, i32) {
    %c0_i32 = arith.constant 0 : i32
    %c0_i32_0 = arith.constant 0 : i32
    return %arg0, %c0_i32 : i32, i32
  }
  func.func @transform_2(%arg0: i32) -> (i32, i32, i32) {
    %c0_i32 = arith.constant 0 : i32
    %c0_i32_0 = arith.constant 0 : i32
    %c0_i32_1 = arith.constant 0 : i32
    %c0_i32_2 = arith.constant 0 : i32
    return %c0_i32, %c0_i32_0, %c0_i32_1 : i32, i32, i32
  }
  func.func @transform_3(%arg0: i32) -> (i32, i32, i32, i32) {
    %c0_i32 = arith.constant 0 : i32
    %c0_i32_0 = arith.constant 0 : i32
    %c0_i32_1 = arith.constant 0 : i32
    %c0_i32_2 = arith.constant 0 : i32
    %c0_i32_3 = arith.constant 0 : i32
    return %c0_i32, %c0_i32_0, %c0_i32_1, %c0_i32_2 : i32, i32, i32, i32
  }
  func.func @transform_4(%arg0: i32) -> (i32, i32) {
    %c0_i32 = arith.constant 0 : i32
    %c0_i32_0 = arith.constant 0 : i32
    %c0_i32_1 = arith.constant 0 : i32
    return %c0_i32, %c0_i32_0 : i32, i32
  }
  func.func @transform_5(%arg0: i32) -> (i32, i32) {
    %c0_i32 = arith.constant 0 : i32
    %c0_i32_0 = arith.constant 0 : i32
    %c0_i32_1 = arith.constant 0 : i32
    return %c0_i32, %c0_i32_0 : i32, i32
  }
  func.func @transform_6(%arg0: i32) -> (i32, i32) {
    %c0_i32 = arith.constant 0 : i32
    %c0_i32_0 = arith.constant 0 : i32
    %c0_i32_1 = arith.constant 0 : i32
    return %c0_i32, %c0_i32_0 : i32, i32
  }
  func.func @transform_7(%arg0: i32) -> (i32, i32) {
    %c0_i32 = arith.constant 0 : i32
    %c0_i32_0 = arith.constant 0 : i32
    return %arg0, %c0_i32 : i32, i32
  }
}

</mosaic_0001>

<bundles_post_ra>
// kernel: tpu_custom_call.1
= control target key start
LH: loop header
LB: loop body
LE: loop exit
PB: predicated region body
PF: predicated region fallthrough
CT: control target
= control target key end

     0   :  { %s2781_s0 = inlined_call_operand.vmem [shape: f32[48,128], index: 0, kind: input, shape index: {}]   ;;  %s2782_s1 = inlined_call_operand.vmem [shape: f32[48,1], index: 1, kind: input, shape index: {}]   ;;  %s2783_s2 = inlined_call_operand.hbm [shape: bf16[3,128,128], index: 2, kind: input, shape index: {}]   ;;  %s2784_s3 = inlined_call_operand.hbm [shape: bf16[2,3,128,128], index: 3, kind: input, shape index: {}]   ;;  %s2785_s4 = inlined_call_operand.hbm [shape: f32[9,128], index: 4, kind: input, shape index: {}]   ;;  %s2786_s5 = inlined_call_operand.hbm [shape: bf16[128,128], index: 5, kind: input, shape index: {}]   ;;  %s2787_s6 = inlined_call_operand.vmem [shape: f32[1,128], index: 6, kind: input, shape index: {}]   ;;  %s2788_s7 = inlined_call_operand.hbm [shape: f32[48,128], index: 7, kind: output, shape index: {}]  }
   0x1   :  { %2790 = sst [smem:[#allocation17_spill]] %s2783_s2 }
   0x2   :  { %2791 = sst [smem:[#allocation18_spill]] %s2784_s3 }
   0x3   :  { %12 = vsyncpa [#allocation3], 0 }
   0x4   :  { %13 = vsyncpa [#allocation6], 0 }
   0x5   :  { %14 = vsyncpa [#allocation9], 0 }
   0x6   :  { %15 = vsyncpa [#allocation4], 0 }
   0x7   :  { %17 = vsyncpa [#allocation4 + $0x1], 0  ;;  %s2472_s24 = smov 0   ;;  %s2474_s25 = smov 0  }
   0x8   :  { %s2476_s26 = smov 0   ;;  %s2478_s27 = smov 0  }
   0x9 LB: > { %2792 = sst [smem:[#allocation15_spill]] %s2415_s26  ;;  %s2493_s28 = sadd.s32 4294967295, %s2419_s27   ;;  %s2419_s27 = sphi %s2478_s27, %s2804_s27   ;;  %s2415_s26 = sphi %s2476_s26, %s2801_s26   ;;  %s2411_s25 = sphi %s2474_s25, %s2803_s25   ;;  %s2407_s24 = sphi %s2472_s24, %s2802_s24  }
   0xa   : > { %s1678_s29 = sadd.s32 4294967294, %s2419_s27   ;;  %s2497_s30 = sadd.s32 1, %s2419_s27  }
   0xb   : > { %s187_s8 = sadd.s32 1, %s2415_s26  ;;  %s184_s9 = ssub.s32 %s2419_s27, %s2497_s30 }
   0xc   : > { %p197_p0 = scmp.ne.s32.totalorder %s2415_s26, %s2411_s25  ;;  %p185_p1 = scmp.eq.s32.totalorder %s184_s9, 0 }
   0xd   : > { %p198_p2 = scmp.eq.s32.totalorder %s2493_s28, 1  ;;  %p203_p3 = scmp.ne.s32.totalorder %s2411_s25, %s2407_s24 }
   0xe   : > { %p204_p4 = scmp.eq.s32.totalorder %s1678_s29, 1  ;;  %p1679_p7 = scmp.ge.s32.totalorder %s2419_s27, 1 }
   0xf   : > { %s2508_s10 = scalar_select %p185_p1, %s2415_s26, %s187_s8  }
  0x10   : > { %p2510_p5 = por %p198_p2, %p197_p0  ;;  %p2514_p6 = por %p204_p4, %p203_p3 }
  0x11   : > { %2793 = sst [smem:[#allocation16_spill]] %s2508_s10  ;;  %p211_p8 = scmp.lt.s32.totalorder %s2419_s27, 3 }
  0x12   : > { %p2148_p9 = scmp.eq.s32.totalorder %s2493_s28, 0  ;;  %s2797_s3 = sld [smem:[#allocation18_spill]] }
  0x13   : > { %p2521_p10 = pnand %p1679_p7, %p211_p8  ;;  %s2798_s2 = sld [smem:[#allocation17_spill]] }
  0x14   : > { %s2421_s21 = smov [#allocation5]   ;;  %s2422_s23 = smov 64  }
  0x15   : > { %p2131_p11 = pneg %p2521_p10  ;;  %s238_s22 = sshll.u32 %s2421_s21, 4  ;;  %s239_s22 = int_to_ptr.vmem [resolvable:$true] %s238_s22 }
  0x16   : > { %s2423_s29 = smov 4   ;;  %s2424_s8 = smov [#allocation2]  }
  0x17   : > { %p2535_p12 = pnand %p2148_p9, %p2131_p11  ;;  %s224_s9 = sshll.u32 %s2424_s8, 4  ;;  %s225_s9 = int_to_ptr.vmem [resolvable:$true] %s224_s9 }
  0x18   : > { %s236_s16 = sshll.u32 %s2797_s3, 4  ;;  %s250_s17 = sshll.u32 %s2785_s4, 4  ;;  %s237_s16 = int_to_ptr.hbm [resolvable:$true] %s236_s16  ;;  %s251_s17 = int_to_ptr.hbm [resolvable:$true] %s250_s17 }
  0x19   : > { %s222_s19 = sshll.u32 %s2798_s2, 4  ;;  %s2425_s18 = smov [#allocation7]   ;;  %s223_s19 = int_to_ptr.hbm [resolvable:$true] %s222_s19 }
  0x1a   : > { %2137 = dma.hbm_to_vmem [thread:$0]  (!%p2535_p12), %s237_s16, 6144, %s239_s22, [#allocation6], %s2422_s23, %s2422_s23, %s2423_s29  }
  0x1b   : > { %2134 = dma.hbm_to_vmem [thread:$0]  (!%p2535_p12), %s223_s19, 3072, %s225_s9, [#allocation3], %s2422_s23, %s2422_s23, %s2423_s29  }
  0x1c   : > { %s252_s21 = sshll.u32 %s2425_s18, 4  ;;  %s264_s10 = sshll.u32 %s2786_s5, 4  ;;  %s253_s21 = int_to_ptr.vmem [resolvable:$true] %s252_s21  ;;  %s265_s10 = int_to_ptr.hbm [resolvable:$true] %s264_s10 }
  0x1d   : > { %s2426_s26 = smov 128   ;;  %s2427_s16 = smov 8  }
  0x1e   : > { %2140 = dma.hbm_to_vmem [thread:$0]  (!%p2535_p12), %s251_s17, 256, %s253_s21, [#allocation6], %s2426_s26, %s2426_s26, %s2427_s16  }
  0x1f   : > { %s2428_s22 = smov [#allocation8]   ;;  %303 = sbr.rel (%p2521_p10) target bundleno = 1281 (0x501), region = 48 }
  0x20   : > { %s266_s8 = sshll.u32 %s2428_s22, 4  ;;  %s267_s8 = int_to_ptr.vmem [resolvable:$true] %s266_s8 }
  0x21   : > { %2143 = dma.hbm_to_vmem [thread:$0]  (!%p2535_p12), %s265_s10, 1024, %s267_s8, [#allocation9], %s2422_s23, %s2422_s23, %s2423_s29  }
  0x24   : > { %2390 = dma.done.wait (%p2148_p9), [#allocation3], 3072  }
  0x25   : > { %2392 = vsyncadd (%p2148_p9), [#allocation3], 4294964224 }
  0x26   : > { %2394 = dma.done.wait (%p2148_p9), [#allocation6], 6400  }
  0x27   : > { %2396 = vsyncadd (%p2148_p9), [#allocation6], 4294960896 }
  0x28   : > { %2398 = dma.done.wait (%p2148_p9), [#allocation9], 1024  }
  0x29   : > { %2400 = vsyncadd (%p2148_p9), [#allocation9], 4294966272  ;;  %s356_s2 = smul.u32 3, %s2493_s28  ;;  %v2429_v0 = vmov 0   ;;  %v2022_v1 = vld [vmem:[#allocation2 + $0x78] sm:$0xff]  ;;  %v2021_v6 = vld [vmem:[#allocation2 + $0x70] sm:$0xff]  ;;  %v566_v44 = vlaneseq }
  0x2a   : > { %2200 = vset.pattern.permute.xlu0 %v2429_v0  ;;  %2201 = vset.pattern.permute.xlu1 %v2429_v0  ;;  %v2030_v2 = vld [vmem:[#allocation2 + $0x38] sm:$0xff]  ;;  %v2029_v7 = vld [vmem:[#allocation2 + $0x30] sm:$0xff]  ;;  %v2020_v10 = vld [vmem:[#allocation2 + $0x68] sm:$0xff]  ;;  %s353_s29 = sand.u32 1, %s2411_s25   ;;  %s2095_s17 = smul.u32 24, %s2493_s28 }
  0x2b   : > { %p357_p13 = scmp.lt.s32.totalorder %s356_s2, 5  ;;  %v2038_v3 = vld [vmem:[#allocation2 + $0xb8] sm:$0xff]  ;;  %463 = vmatpush.bf16.msra.mxu0 %v2022_v1  ;;  %545 = vmatpush.bf16.msra.mxu1 %v2030_v2  ;;  %v2037_v8 = vld [vmem:[#allocation2 + $0xb0] sm:$0xff]  ;;  %v2028_v11 = vld [vmem:[#allocation2 + $0x28] sm:$0xff]  ;;  %v2598_v47 = vshrl.u32 %v566_v44, 7  ;;  %s2112_s15 = smul.u32 24, %s353_s29 }
  0x2c   : > { %640 = vmatpush.bf16.msra.mxu2 %v2038_v3  ;;  %v2036_v12 = vld [vmem:[#allocation2 + $0xa8] sm:$0xff]  ;;  %v2019_v13 = vld [vmem:[#allocation2 + $0x60] sm:$0xff]  ;;  %v2018_v16 = vld [vmem:[#allocation2 + $0x58] sm:$0xff]  ;;  %s1559_s16 = scalar_lea.hbm %s2788_s7, %s2095_s17  ;;  %s1548_s28 = scalar_lea.sflag [#allocation4], %s353_s29 }
  0x2d   : > { %s2806_s2 = smov (!%p357_p13, %s356_s2), 5  ;;  %v2027_v14 = vld [vmem:[#allocation2 + $0x20] sm:$0xff]  ;;  %v2026_v17 = vld [vmem:[#allocation2 + $0x18] sm:$0xff]  ;;  %v2017_v19 = vld [vmem:[#allocation2 + $0x50] sm:$0xff]  ;;  %vm568_vm0 = vcmp.lt.s32.totalorder %v2598_v47, 1  ;;  %vm661_vm1 = vcmp.lt.s32.totalorder %v2598_v47, 7 }
  0x2e   : > { %s1690_s3 = sshll.u32 %s2806_s2, 3  ;;  %v2035_v15 = vld [vmem:[#allocation2 + $0xa0] sm:$0xff]  ;;  %v2034_v18 = vld [vmem:[#allocation2 + $0x98] sm:$0xff]  ;;  %v2025_v20 = vld [vmem:[#allocation2 + $0x10] sm:$0xff]  ;;  %s355_s22 = scalar_lea.vmem [#allocation10], %s2112_s15 }
  0x2f   : > { %s366_s13 = scalar_lea.vmem %s2782_s1, %s1690_s3  ;;  %464 = vmatpush.bf16.msra.mxu0 %v2021_v6  ;;  %546 = vmatpush.bf16.msra.mxu1 %v2029_v7  ;;  %v2033_v21 = vld [vmem:[#allocation2 + $0x90] sm:$0xff]  ;;  %v2016_v22 = vld [vmem:[#allocation2 + $0x48] sm:$0xff]  ;;  %v2015_v25 = vld [vmem:[#allocation2 + $0x40] sm:$0xff]  ;;  %s2583_s23 = scalar_lea.vmem %s2781_s0, %s1690_s3 }
  0x30   : > { %v372_v4 = vld [vmem:[%s366_s13] sm:$0xff]  ;;  %v374_v5 = vld [vmem:[%s366_s13 + $0x10] sm:$0xff]  ;;  %v373_v9 = vld [vmem:[%s366_s13 + $0x8] sm:$0xff]  ;;  %641 = vmatpush.bf16.msra.mxu2 %v2037_v8  ;;  %s1560_s8 = sshll.u32 %s355_s22, 4  ;;  %s1562_s2 = sshll.u32 %s1559_s16, 4  ;;  %s1561_s8 = int_to_ptr.vmem [resolvable:$true] %s1560_s8  ;;  %s1563_s2 = int_to_ptr.hbm [resolvable:$true] %s1562_s2 }
  0x31   : > { %379 = vperm.xlu0 %2200, %v372_v4   ;;  %389 = vperm.xlu1 %2201, %v374_v5   ;;  %v2024_v23 = vld [vmem:[#allocation2 + $0x8] sm:$0xff]  ;;  %v2023_v26 = vld [vmem:[#allocation2] sm:$0xff]  ;;  %v371_v36 = vld [vmem:[%s2583_s23 + $0x10] sm:$0xff]  ;;  %s2359_s3 = sshra.s32 %s1563_s2, 4  ;;  %s2365_s19 = scalar_lea.hbm %s2788_s7, 48  ;;  %s2360_s3 = int_to_ptr.hbm [resolvable:$true] %s2359_s3 }
  0x32   : > { %v2032_v24 = vld [vmem:[#allocation2 + $0x88] sm:$0xff]  ;;  %v2031_v27 = vld [vmem:[#allocation2 + $0x80] sm:$0xff]  ;;  %s2361_s26 = scalar_lea.hbm %s2360_s3, 24  ;;  %p2366_p3 = scmp.lt.s32.totalorder %s2360_s3, %s2788_s7 }
  0x33   : > { %465 = vmatpush.bf16.msra.mxu0 %v2020_v10  ;;  %547 = vmatpush.bf16.msra.mxu1 %v2028_v11  ;;  %v369_v29 = vld [vmem:[%s2583_s23] sm:$0xff]  ;;  %v370_v30 = vld [vmem:[%s2583_s23 + $0x8] sm:$0xff]  ;;  %p2362_p0 = scmp.ne.s32.totalorder %s2360_s3, %s2361_s26  ;;  %p2367_p4 = scmp.lt.s32.totalorder %s2365_s19, %s2361_s26 }
  0x34   : > { %642 = vmatpush.bf16.msra.mxu2 %v2036_v12  ;;  %v2595_v45 = vld [vmem:[#allocation7] sm:$0xff]  ;;  %v2056_v44 = vld [vmem:[#allocation5 + $0x88] sm:$0xff] }
  0x35   : > { %v414_v46 = vperm.slane %v2595_v45, 0  ;;  %v2093_v47 = vld [vmem:[#allocation8 + $0x30] sm:$0xff]  ;;  %p2363_p1 = pnand %p2362_p0, %p2510_p5  ;;  %p2368_p7 = por %p2367_p4, %p2366_p3 }
  0x37   : > { %466 = vmatpush.bf16.msra.mxu0 %v2019_v13  ;;  %548 = vmatpush.bf16.msra.mxu1 %v2027_v14  ;;  %p2364_p2 = pneg %p2363_p1 }
  0x38   : > { %643 = vmatpush.bf16.msra.mxu2 %v2035_v15  ;;  %v2062_v15 = vld [vmem:[#allocation5 + $0xb8] sm:$0xff] }
  0x39   : > { %384 = vperm.xlu0 %2200, %v373_v9   ;;  %p2369_p8 = pnand %p2368_p7, %p2364_p2 }
  0x3b   : > { %467 = vmatpush.bf16.msra.mxu0 %v2018_v16  ;;  %549 = vmatpush.bf16.msra.mxu1 %v2026_v17  ;;  %v2046_v16 = vld [vmem:[#allocation5 + $0x78] sm:$0xff] }
  0x3c   : > { %644 = vmatpush.bf16.msra.mxu2 %v2034_v18  ;;  %v2054_v17 = vld [vmem:[#allocation5 + $0x38] sm:$0xff]  ;;  %819 = vmatpush.bf16.msra.mxu3 %v2046_v16  ;;  %v2061_v18 = vld [vmem:[#allocation5 + $0xb0] sm:$0xff] }
  0x3f   : > { %468 = vmatpush.bf16.msra.mxu0 %v2017_v19  ;;  %550 = vmatpush.bf16.msra.mxu1 %v2025_v20  ;;  %v2045_v19 = vld [vmem:[#allocation5 + $0x70] sm:$0xff] }
  0x40   : > { %645 = vmatpush.bf16.msra.mxu2 %v2033_v21  ;;  %v2053_v20 = vld [vmem:[#allocation5 + $0x30] sm:$0xff]  ;;  %820 = vmatpush.bf16.msra.mxu3 %v2045_v19  ;;  %v2060_v21 = vld [vmem:[#allocation5 + $0xa8] sm:$0xff] }
  0x43   : > { %469 = vmatpush.bf16.msra.mxu0 %v2016_v22  ;;  %551 = vmatpush.bf16.msra.mxu1 %v2024_v23  ;;  %v2044_v22 = vld [vmem:[#allocation5 + $0x68] sm:$0xff] }
  0x44   : > { %646 = vmatpush.bf16.msra.mxu2 %v2032_v24  ;;  %v2052_v23 = vld [vmem:[#allocation5 + $0x28] sm:$0xff]  ;;  %821 = vmatpush.bf16.msra.mxu3 %v2044_v22  ;;  %v2059_v24 = vld [vmem:[#allocation5 + $0xa0] sm:$0xff] }
  0x47   : > { %470 = vmatpush.bf16.msra.mxu0 %v2015_v25  ;;  %552 = vmatpush.bf16.msra.mxu1 %v2023_v26  ;;  %v2043_v25 = vld [vmem:[#allocation5 + $0x60] sm:$0xff] }
  0x48   : > { %647 = vmatpush.bf16.msra.mxu2 %v2031_v27  ;;  %v2051_v26 = vld [vmem:[#allocation5 + $0x20] sm:$0xff]  ;;  %822 = vmatpush.bf16.msra.mxu3 %v2043_v25  ;;  %v2058_v27 = vld [vmem:[#allocation5 + $0x98] sm:$0xff] }
  0x4b   : > { %993 = vmatpush.bf16.msrb.mxu1 %v2062_v15  ;;  %901 = vmatpush.bf16.msrb.mxu0 %v2054_v17  ;;  %v737_v15 = vperm.slane %v2595_v45, 1 }
  0x4f   : > { %994 = vmatpush.bf16.msrb.mxu1 %v2061_v18  ;;  %902 = vmatpush.bf16.msrb.mxu0 %v2053_v20 }
  0x53   : > { %995 = vmatpush.bf16.msrb.mxu1 %v2060_v21  ;;  %903 = vmatpush.bf16.msrb.mxu0 %v2052_v23  ;;  %v741_v23 = vperm.slane %v2595_v45, 2 }
  0x57   : > { %996 = vmatpush.bf16.msrb.mxu1 %v2059_v24  ;;  %904 = vmatpush.bf16.msrb.mxu0 %v2051_v26 }
  0x5b   : > { %997 = vmatpush.bf16.msrb.mxu1 %v2058_v27 }
  0xa3   : > { %v2576_v28 = vpop.permute.xlu0 %379  ;;  %v2591_v35 = vpop.permute.xlu1 %389 }
  0xa4   : > { %v392_v32 = vmul.f32 %v2576_v28, %v369_v29  ;;  %v394_v37 = vmul.f32 %v2591_v35, %v371_v36  ;;  %v2042_v29 = vld [vmem:[#allocation5 + $0x58] sm:$0xff] }
  0xa5   : > { %823 = vmatpush.bf16.msra.mxu3 %v2042_v29 }
  0xa6   : > { %v396_v38 = vpack.c.bf16 %v394_v37, %v394_v37  ;;  %v2057_v37 = vld [vmem:[#allocation5 + $0x90] sm:$0xff] }
  0xa7   : > { %998 = vmatpush.bf16.msrb.mxu1 %v2057_v37 }
  0xab   : > { %v2587_v31 = vpop.permute.xlu0 %384  ;;  %999 = vmatpush.bf16.msrb.mxu1 %v2056_v44 }
  0xac   : > { %v393_v33 = vmul.f32 %v2587_v31, %v370_v30  ;;  %v2050_v30 = vld [vmem:[#allocation5 + $0x18] sm:$0xff] }
  0xad   : > { %905 = vmatpush.bf16.msrb.mxu0 %v2050_v30 }
  0xae   : > { %v395_v34 = vpack.c.bf16 %v393_v33, %v392_v32 }
  0xb0   : > { %471 = vmatmul.bf16.vlgmr.msra.gmra.mxu0 %v395_v34  ;;  %553 = vmatmul.bf16.vlgmr.msra.gmra.mxu1 %v395_v34 }
  0xb1   : > { %648 = vmatmul.bf16.vlgmr.msra.gmra.mxu2 %v395_v34 }
  0xc0   : > { %476 = vmatmul.bf16.gmra.mxu0 %v396_v38  ;;  %558 = vmatmul.bf16.gmra.mxu1 %v396_v38 }
  0xc1   : > { %653 = vmatmul.bf16.gmra.mxu2 %v396_v38  ;;  %v2041_v38 = vld [vmem:[#allocation5 + $0x50] sm:$0xff] }
  0xc2   : > { %824 = vmatpush.bf16.msra.mxu3 %v2041_v38 }
 0x12d   : > { %v472_v39 = vpop.f32.mrf.mxu0  ;;  %v554_v40 = vpop.f32.mrf.mxu1 }
 0x12e   : > { %v563_v51 = vrot.slane %v554_v40, 7  ;;  %v473_v54 = vadd.f32 %v472_v39, %v414_v46  ;;  %v2049_v39 = vld [vmem:[#allocation5 + $0x10] sm:$0xff] }
 0x12f   : > { %906 = vmatpush.bf16.msrb.mxu0 %v2049_v39 }
 0x134   : > { %v649_v41 = vpop.f32.mrf.mxu2 }
 0x135   : > { %v474_v42 = vpop.f32.mrf.mxu0  ;;  %v556_v43 = vpop.f32.mrf.mxu1  ;;  %v658_v56 = vrot.slane %v649_v41, 1 }
 0x136   : > { %v564_v55 = vrot.slane %v556_v43, 7  ;;  %v475_v59 = vadd.f32 %v474_v42, %v414_v46 }
 0x138   : > { %v570_v61 = vsel %vm568_vm0, %v563_v51, %v564_v55 }
 0x139   : > { %v573_v3 = vadd.f32 %v570_v61, %v475_v59 }
 0x13c   : > { %v651_v48 = vpop.f32.mrf.mxu2 }
 0x13d   : > { %v477_v49 = vpop.f32.mrf.mxu0  ;;  %v559_v50 = vpop.f32.mrf.mxu1  ;;  %v659_v52 = vrot.slane %v651_v48, 1  ;;  %v2048_v48 = vld [vmem:[#allocation5 + $0x8] sm:$0xff] }
 0x13e   : > { %v565_v53 = vrot.slane %v559_v50, 7  ;;  %v478_v9 = vadd.f32 %v477_v49, %v414_v46  ;;  %v2040_v46 = vld [vmem:[#allocation5 + $0x48] sm:$0xff]  ;;  %907 = vmatpush.bf16.msrb.mxu0 %v2048_v48 }
 0x13f   : > { %v663_v60 = vsel %vm661_vm1, %v658_v56, %v659_v52  ;;  %825 = vmatpush.bf16.msra.mxu3 %v2040_v46 }
 0x140   : > { %v571_v57 = vsel %vm568_vm0, %v565_v53, %v563_v51  ;;  %v569_v10 = vsel %vm568_vm0, %v564_v55, %v565_v53  ;;  %v2039_v55 = vld [vmem:[#allocation5 + $0x40] sm:$0xff] }
 0x141   : > { %v572_v58 = vadd.f32 %v571_v57, %v473_v54  ;;  %v574_v12 = vadd.f32 %v569_v10, %v478_v9  ;;  %v2055_v54 = vld [vmem:[#allocation5 + $0x80] sm:$0xff] }
 0x142   : > { %1000 = vmatpush.bf16.msrb.mxu1 %v2055_v54 }
 0x143   : > { %v2608_v62 = vadd.f32 %v663_v60, %v572_v58  ;;  %826 = vmatpush.bf16.msra.mxu3 %v2039_v55 }
 0x144   : > { %v654_v63 = vpop.f32.mrf.mxu2 }
 0x145   : > { %v660_v0 = vrot.slane %v654_v63, 1  ;;  %v479_v1 = vpop.f32.mrf.mxu0  ;;  %v561_v2 = vpop.f32.mrf.mxu1  ;;  %668 = vadd.xlane.f32.xlu1 %v2608_v62  ;;  %v677_v8 = vmul.f32 %v2608_v62, %v2608_v62 }
 0x147   : > { %v662_v4 = vsel %vm661_vm1, %v659_v52, %v660_v0  ;;  %v664_v11 = vsel %vm661_vm1, %v660_v0, %v658_v56  ;;  %v2047_v56 = vld [vmem:[#allocation5] sm:$0xff] }
 0x148   : > { %v2613_v5 = vadd.f32 %v662_v4, %v573_v3  ;;  %v2624_v13 = vadd.f32 %v664_v11, %v574_v12  ;;  %908 = vmatpush.bf16.msrb.mxu0 %v2047_v56 }
 0x14a   : > { %670 = vadd.xlane.f32.xlu2 %v2613_v5  ;;  %v678_v6 = vmul.f32 %v2613_v5, %v2613_v5  ;;  %v679_v14 = vmul.f32 %v2624_v13, %v2624_v13 }
 0x14c   : > { %v656_v7 = vpop.f32.mrf.mxu2  ;;  %682 = vadd.xlane.f32.xlu0 %v678_v6 }
 0x152   : > { %680 = vadd.xlane.f32.xlu2 %v677_v8 }
 0x15a   : > { %672 = vadd.xlane.f32.xlu2 %v2624_v13 }
 0x162   : > { %684 = vadd.xlane.f32.xlu2 %v679_v14 }
 0x1b8   : > { %v669_v34 = vpop.xlane.xlu1 %668 }
 0x1b9   : > { %v674_v42 = vmul.f32 0.03125, %v669_v34 }
 0x1bb   : > { %v689_v51 = vmul.f32 %v674_v42, %v674_v42  ;;  %v698_v25 = vsub.f32 %v2608_v62, %v674_v42 }
 0x1bd   : > { %v671_v32 = vpop.xlane.xlu2 %670 }
 0x1be   : > { %v675_v33 = vmul.f32 0.03125, %v671_v32 }
 0x1bf   : > { %v683_v36 = vpop.xlane.xlu0 %682 }
 0x1c0   : > { %v690_v40 = vmul.f32 %v675_v33, %v675_v33  ;;  %v687_v41 = vmul.f32 0.03125, %v683_v36  ;;  %v699_v12 = vsub.f32 %v2613_v5, %v675_v33 }
 0x1c2   : > { %v693_v43 = vsub.f32 %v687_v41, %v690_v40 }
 0x1c4   : > { %v696_v49 = vmax.f32 %v693_v43, 0.0 }
 0x1c5   : > { %v681_v50 = vpop.xlane.xlu2 %680 }
 0x1c6   : > { %v702_v52 = vadd.f32 1e-05, %v696_v49  ;;  %v686_v53 = vmul.f32 0.03125, %v681_v50 }
 0x1c8   : > { %2204 = vrsqrt.f32 %v702_v52  ;;  %v692_v57 = vsub.f32 %v686_v53, %v689_v51  ;;  %vm720_vm3 = vweird.f32 %v702_v52 }
 0x1ca   : > { %v695_v58 = vmax.f32 %v692_v57, 0.0 }
 0x1cc   : > { %v701_v59 = vadd.f32 1e-05, %v695_v58 }
 0x1cd   : > { %v673_v60 = vpop.xlane.xlu2 %672 }
 0x1ce   : > { %v2205_v61 = vpop.eup %2204  ;;  %2206 = vrsqrt.f32 %v701_v59  ;;  %v676_v1 = vmul.f32 0.03125, %v673_v60  ;;  %vm710_vm6 = vweird.f32 %v701_v59 }
 0x1cf   : > { %v715_v63 = vmul.f32 %v2205_v61, %v702_v52  ;;  %vm721_vm2 = vweird.f32 %v2205_v61 }
 0x1d0   : > { %v691_v8 = vmul.f32 %v676_v1, %v676_v1  ;;  %vm722_vm4 = vmor %vm720_vm3, %vm721_vm2  ;;  %v700_v42 = vsub.f32 %v2624_v13, %v676_v1  ;;  %v770_v13 = vperm.slane %v2595_v45, 3 }
 0x1d1   : > { %v716_v0 = vmul.f32 %v2205_v61, %v715_v63 }
 0x1d3   : > { %v717_v2 = vmul.f32 0.5, %v716_v0 }
 0x1d4   : > { %v2207_v3 = vpop.eup %2206 }
 0x1d5   : > { %v718_v4 = vsub.f32 1.5, %v717_v2  ;;  %v705_v6 = vmul.f32 %v2207_v3, %v701_v59  ;;  %v685_v7 = vpop.xlane.xlu2 %684  ;;  %vm711_vm5 = vweird.f32 %v2207_v3 }
 0x1d6   : > { %v688_v9 = vmul.f32 0.03125, %v685_v7  ;;  %vm712_vm7 = vmor %vm710_vm6, %vm711_vm5 }
 0x1d7   : > { %v719_v10 = vmul.f32 %v2205_v61, %v718_v4  ;;  %v706_v11 = vmul.f32 %v2207_v3, %v705_v6 }
 0x1d8   : > { %v694_v14 = vsub.f32 %v688_v9, %v691_v8 }
 0x1d9   : > { %v723_v16 = vsel %vm722_vm4, %v2205_v61, %v719_v10  ;;  %v707_v17 = vmul.f32 0.5, %v706_v11 }
 0x1da   : > { %v735_v18 = vmul.f32 %v723_v16, %v699_v12  ;;  %v697_v19 = vmax.f32 %v694_v14, 0.0 }
 0x1db   : > { %v708_v20 = vsub.f32 1.5, %v707_v17 }
 0x1dc   : > { %v703_v21 = vadd.f32 1e-05, %v697_v19  ;;  %v739_v22 = vmul.f32 %v737_v15, %v735_v18 }
 0x1dd   : > { %v709_v24 = vmul.f32 %v2207_v3, %v708_v20 }
 0x1de   : > { %2208 = vrsqrt.f32 %v703_v21  ;;  %v743_v27 = vadd.f32 %v741_v23, %v739_v22  ;;  %vm730_vm9 = vweird.f32 %v703_v21 }
 0x1df   : > { %v713_v5 = vsel %vm712_vm7, %v2207_v3, %v709_v24 }
 0x1e0   : > { %v734_v26 = vmul.f32 %v713_v5, %v698_v25  ;;  %v746_v33 = vmax.f32 %v743_v27, 0.0  ;;  %v2070_v27 = vld [vmem:[#allocation5 + $0x138] sm:$0xff] }
 0x1e1   : > { %1171 = vmatpush.bf16.msrb.mxu2 %v2070_v27 }
 0x1e2   : > { %v738_v29 = vmul.f32 %v737_v15, %v734_v26  ;;  %v749_v39 = vmul.f32 %v746_v33, %v2587_v31  ;;  %v2077_v33 = vld [vmem:[#allocation5 + $0xf0] sm:$0xff] }
 0x1e4   : > { %v2209_v30 = vpop.eup %2208  ;;  %v742_v32 = vadd.f32 %v741_v23, %v738_v29  ;;  %v2078_v29 = vld [vmem:[#allocation5 + $0xf8] sm:$0xff] }
 0x1e5   : > { %v725_v34 = vmul.f32 %v2209_v30, %v703_v21  ;;  %vm731_vm8 = vweird.f32 %v2209_v30  ;;  %1254 = vmatpush.bf16.msrb.mxu3 %v2078_v29 }
 0x1e6   : > { %v745_v36 = vmax.f32 %v742_v32, 0.0  ;;  %vm732_vm10 = vmor %vm730_vm9, %vm731_vm8  ;;  %v2069_v32 = vld [vmem:[#allocation5 + $0x130] sm:$0xff] }
 0x1e7   : > { %v726_v37 = vmul.f32 %v2209_v30, %v725_v34  ;;  %v2668_v34 = vld [vmem:[#allocation5 + $0x170] sm:$0xff]  ;;  %1172 = vmatpush.bf16.msrb.mxu2 %v2069_v32 }
 0x1e8   : > { %v748_v38 = vmul.f32 %v745_v36, %v2576_v28  ;;  %v2068_v36 = vld [vmem:[#allocation5 + $0x128] sm:$0xff] }
 0x1e9   : > { %v727_v40 = vmul.f32 0.5, %v726_v37  ;;  %1255 = vmatpush.bf16.msrb.mxu3 %v2077_v33  ;;  %v2076_v37 = vld [vmem:[#allocation5 + $0xe8] sm:$0xff]  ;;  %v1089_v33 = vperm.slane %v2595_v45, 4 }
 0x1ea   : > { %v751_v41 = vpack.c.bf16 %v749_v39, %v748_v38  ;;  %v2671_v38 = vld [vmem:[#allocation5 + $0x168] sm:$0xff] }
 0x1eb   : > { %v728_v43 = vsub.f32 1.5, %v727_v40  ;;  %1173 = vmatpush.bf16.msrb.mxu2 %v2068_v36 }
 0x1ec   : > { %827 = vmatmul.bf16.vlgmr.msra.gmra.mxu3 %v751_v41  ;;  %909 = vmatmul.bf16.vlgmr.msrb.gmra.mxu0 %v751_v41 }
 0x1ed   : > { %v729_v62 = vmul.f32 %v2209_v30, %v728_v43  ;;  %1001 = vmatmul.bf16.vlgmr.msrb.gmra.mxu1 %v751_v41  ;;  %1256 = vmatpush.bf16.msrb.mxu3 %v2076_v37  ;;  %v2067_v43 = vld [vmem:[#allocation5 + $0x120] sm:$0xff] }
 0x1ef   : > { %v733_v44 = vsel %vm732_vm10, %v2209_v30, %v729_v62  ;;  %v2665_v30 = vld [vmem:[#allocation5 + $0x178] sm:$0xff]  ;;  %v2075_v62 = vld [vmem:[#allocation5 + $0xe0] sm:$0xff]  ;;  %1174 = vmatpush.bf16.msrb.mxu2 %v2067_v43 }
 0x1f0   : > { %v736_v46 = vmul.f32 %v733_v44, %v700_v42  ;;  %1346 = vmatpush.bf16.msra.mxu0 %v2665_v30  ;;  %v2676_v42 = vld [vmem:[#allocation5 + $0x160] sm:$0xff] }
 0x1f1   : > { %1257 = vmatpush.bf16.msrb.mxu3 %v2075_v62 }
 0x1f2   : > { %v740_v48 = vmul.f32 %v737_v15, %v736_v46 }
 0x1f4   : > { %v744_v49 = vadd.f32 %v741_v23, %v740_v48  ;;  %1347 = vmatpush.bf16.msra.mxu0 %v2668_v34 }
 0x1f6   : > { %v747_v50 = vmax.f32 %v744_v49, 0.0  ;;  %v2066_v49 = vld [vmem:[#allocation5 + $0x118] sm:$0xff] }
 0x1f7   : > { %1175 = vmatpush.bf16.msrb.mxu2 %v2066_v49 }
 0x1f8   : > { %v750_v51 = vmul.f32 %v747_v50, %v2591_v35  ;;  %1348 = vmatpush.bf16.msra.mxu0 %v2671_v38  ;;  %v2074_v50 = vld [vmem:[#allocation5 + $0xd8] sm:$0xff] }
 0x1f9   : > { %1258 = vmatpush.bf16.msrb.mxu3 %v2074_v50 }
 0x1fa   : > { %v752_v52 = vpack.c.bf16 %v750_v51, %v750_v51  ;;  %v2681_v51 = vld [vmem:[#allocation5 + $0x158] sm:$0xff] }
 0x1fc   : > { %832 = vmatmul.bf16.gmra.mxu3 %v752_v52  ;;  %914 = vmatmul.bf16.gmra.mxu0 %v752_v52 }
 0x1fd   : > { %1006 = vmatmul.bf16.gmra.mxu1 %v752_v52  ;;  %1349 = vmatpush.bf16.msra.mxu0 %v2676_v42 }
 0x201   : > { %1350 = vmatpush.bf16.msra.mxu0 %v2681_v51 }
 0x269   : > { %v910_v53 = vpop.f32.mrf.mxu0 }
 0x26a   : > { %v1002_v54 = vpop.f32.mrf.mxu1  ;;  %v919_v59 = vrot.slane %v910_v53, 7 }
 0x26b   : > { %v1011_v15 = vrot.slane %v1002_v54, 1 }
 0x26f   : > { %v828_v55 = vpop.f32.mrf.mxu3 }
 0x270   : > { %v829_v11 = vadd.f32 %v828_v55, %v770_v13  ;;  %v2065_v55 = vld [vmem:[#allocation5 + $0x110] sm:$0xff] }
 0x271   : > { %v912_v56 = vpop.f32.mrf.mxu0  ;;  %1176 = vmatpush.bf16.msrb.mxu2 %v2065_v55 }
 0x272   : > { %v1004_v57 = vpop.f32.mrf.mxu1  ;;  %v920_v58 = vrot.slane %v912_v56, 7  ;;  %v2073_v56 = vld [vmem:[#allocation5 + $0xd0] sm:$0xff] }
 0x273   : > { %v1012_v3 = vrot.slane %v1004_v57, 1  ;;  %v2684_v57 = vld [vmem:[#allocation5 + $0x150] sm:$0xff]  ;;  %1259 = vmatpush.bf16.msrb.mxu3 %v2073_v56 }
 0x274   : > { %v923_v63 = vsel %vm568_vm0, %v919_v59, %v920_v58  ;;  %1351 = vmatpush.bf16.msra.mxu0 %v2684_v57 }
 0x275   : > { %v1015_v23 = vsel %vm661_vm1, %v1011_v15, %v1012_v3 }
 0x277   : > { %v830_v60 = vpop.f32.mrf.mxu3 }
 0x278   : > { %v831_v61 = vadd.f32 %v830_v60, %v770_v13  ;;  %v2689_v60 = vld [vmem:[#allocation5 + $0x148] sm:$0xff] }
 0x279   : > { %v915_v0 = vpop.f32.mrf.mxu0  ;;  %1352 = vmatpush.bf16.msra.mxu0 %v2689_v60 }
 0x27a   : > { %v926_v1 = vadd.f32 %v923_v63, %v831_v61  ;;  %v1007_v2 = vpop.f32.mrf.mxu1  ;;  %v921_v4 = vrot.slane %v915_v0, 7 }
 0x27b   : > { %v1013_v6 = vrot.slane %v1007_v2, 1 }
 0x27c   : > { %v924_v9 = vsel %vm568_vm0, %v921_v4, %v919_v59  ;;  %v922_v16 = vsel %vm568_vm0, %v920_v58, %v921_v4  ;;  %v2072_v59 = vld [vmem:[#allocation5 + $0xc8] sm:$0xff]  ;;  %v2071_v4 = vld [vmem:[#allocation5 + $0xc0] sm:$0xff] }
 0x27d   : > { %v1014_v7 = vsel %vm661_vm1, %v1012_v3, %v1013_v6  ;;  %v925_v20 = vadd.f32 %v924_v9, %v829_v11  ;;  %v1016_v21 = vsel %vm661_vm1, %v1013_v6, %v1011_v15  ;;  %1260 = vmatpush.bf16.msrb.mxu3 %v2072_v59  ;;  %v2063_v3 = vld [vmem:[#allocation5 + $0x100] sm:$0xff] }
 0x27e   : > { %v2642_v8 = vadd.f32 %v1014_v7, %v926_v1  ;;  %v2079_v6 = vld [vmem:[#allocation5 + $0x140] sm:$0xff] }
 0x27f   : > { %v833_v10 = vpop.f32.mrf.mxu3  ;;  %v2657_v24 = vadd.f32 %v1015_v23, %v925_v20  ;;  %1353 = vmatpush.bf16.msra.mxu0 %v2079_v6 }
 0x280   : > { %1022 = vadd.xlane.f32.xlu2 %v2642_v8  ;;  %v834_v12 = vadd.f32 %v833_v10, %v770_v13  ;;  %v1030_v14 = vmul.f32 %v2642_v8, %v2642_v8  ;;  %v2064_v13 = vld [vmem:[#allocation5 + $0x108] sm:$0xff] }
 0x281   : > { %v917_v17 = vpop.f32.mrf.mxu0  ;;  %v1029_v26 = vmul.f32 %v2657_v24, %v2657_v24  ;;  %1177 = vmatpush.bf16.msrb.mxu2 %v2064_v13  ;;  %1261 = vmatpush.bf16.msrb.mxu3 %v2071_v4 }
 0x282   : > { %v927_v18 = vadd.f32 %v922_v16, %v834_v12  ;;  %1034 = vadd.xlane.f32.xlu1 %v1030_v14  ;;  %v1009_v19 = vpop.f32.mrf.mxu1 }
 0x284   : > { %v2653_v22 = vadd.f32 %v1016_v21, %v927_v18 }
 0x285   : > { %1178 = vmatpush.bf16.msrb.mxu2 %v2063_v3 }
 0x286   : > { %v1031_v25 = vmul.f32 %v2653_v22, %v2653_v22 }
 0x287   : > { %v835_v5 = vpop.f32.mrf.mxu3 }
 0x288   : > { %1020 = vadd.xlane.f32.xlu2 %v2657_v24  ;;  %1036 = vadd.xlane.f32.xlu0 %v1031_v25 }
 0x289   : > { %2096 = vmatpush.bf16.msra.mxu2 %v2665_v30 }
 0x28d   : > { %2097 = vmatpush.bf16.msra.mxu2 %v2668_v34 }
 0x290   : > { %1032 = vadd.xlane.f32.xlu2 %v1029_v26 }
 0x291   : > { %2098 = vmatpush.bf16.msra.mxu2 %v2671_v38  ;;  %v1093_v38 = vperm.slane %v2595_v45, 5 }
 0x295   : > { %2099 = vmatpush.bf16.msra.mxu2 %v2676_v42 }
 0x298   : > { %1024 = vadd.xlane.f32.xlu2 %v2653_v22 }
 0x299   : > { %2100 = vmatpush.bf16.msra.mxu2 %v2681_v51 }
 0x29d   : > { %2101 = vmatpush.bf16.msra.mxu2 %v2684_v57 }
 0x2a1   : > { %2102 = vmatpush.bf16.msra.mxu2 %v2689_v60 }
 0x2a5   : > { %2103 = vmatpush.bf16.msra.mxu2 %v2079_v6 }
 0x2f3   : > { %v1023_v39 = vpop.xlane.xlu2 %1022 }
 0x2f4   : > { %v2673_v40 = vmul.f32 0.03125, %v1023_v39 }
 0x2f5   : > { %v1035_v41 = vpop.xlane.xlu1 %1034 }
 0x2f6   : > { %v1042_v44 = vmul.f32 %v2673_v40, %v2673_v40  ;;  %v1039_v46 = vmul.f32 0.03125, %v1035_v41  ;;  %v1051_v27 = vsub.f32 %v2642_v8, %v2673_v40 }
 0x2f8   : > { %v1045_v48 = vsub.f32 %v1039_v46, %v1042_v44 }
 0x2fa   : > { %v1048_v52 = vmax.f32 %v1045_v48, 0.0 }
 0x2fb   : > { %v1021_v53 = vpop.xlane.xlu2 %1020  ;;  %v1037_v15 = vpop.xlane.xlu0 %1036 }
 0x2fc   : > { %v1054_v54 = vadd.f32 1e-05, %v1048_v52  ;;  %v2686_v58 = vmul.f32 0.03125, %v1021_v53  ;;  %v1040_v18 = vmul.f32 0.03125, %v1037_v15 }
 0x2fe   : > { %2210 = vrsqrt.f32 %v1054_v54  ;;  %v1041_v0 = vmul.f32 %v2686_v58, %v2686_v58  ;;  %vm1072_vm12 = vweird.f32 %v1054_v54  ;;  %v1050_v8 = vsub.f32 %v2657_v24, %v2686_v58 }
 0x303   : > { %v1033_v61 = vpop.xlane.xlu2 %1032 }
 0x304   : > { %v2211_v63 = vpop.eup %2210  ;;  %v1038_v1 = vmul.f32 0.03125, %v1033_v61 }
 0x305   : > { %v1067_v2 = vmul.f32 %v2211_v63, %v1054_v54  ;;  %vm1073_vm11 = vweird.f32 %v2211_v63 }
 0x306   : > { %v1044_v7 = vsub.f32 %v1038_v1, %v1041_v0  ;;  %vm1074_vm13 = vmor %vm1072_vm12, %vm1073_vm11 }
 0x307   : > { %v1068_v9 = vmul.f32 %v2211_v63, %v1067_v2  ;;  %v1122_v2 = vperm.slane %v2595_v45, 6 }
 0x308   : > { %v1047_v10 = vmax.f32 %v1044_v7, 0.0 }
 0x309   : > { %v1069_v11 = vmul.f32 0.5, %v1068_v9 }
 0x30a   : > { %v1053_v12 = vadd.f32 1e-05, %v1047_v10 }
 0x30b   : > { %v1070_v14 = vsub.f32 1.5, %v1069_v11  ;;  %v1025_v16 = vpop.xlane.xlu2 %1024 }
 0x30c   : > { %2212 = vrsqrt.f32 %v1053_v12  ;;  %v1028_v17 = vmul.f32 0.03125, %v1025_v16  ;;  %vm1062_vm15 = vweird.f32 %v1053_v12 }
 0x30d   : > { %v1071_v20 = vmul.f32 %v2211_v63, %v1070_v14 }
 0x30e   : > { %v1043_v19 = vmul.f32 %v1028_v17, %v1028_v17  ;;  %v1052_v24 = vsub.f32 %v2653_v22, %v1028_v17 }
 0x30f   : > { %v1075_v5 = vsel %vm1074_vm13, %v2211_v63, %v1071_v20 }
 0x310   : > { %v1046_v21 = vsub.f32 %v1040_v18, %v1043_v19  ;;  %v1087_v32 = vmul.f32 %v1075_v5, %v1051_v27 }
 0x312   : > { %v2213_v23 = vpop.eup %2212  ;;  %v1049_v25 = vmax.f32 %v1046_v21, 0.0  ;;  %v1091_v37 = vmul.f32 %v1089_v33, %v1087_v32 }
 0x313   : > { %v1057_v26 = vmul.f32 %v2213_v23, %v1053_v12  ;;  %vm1063_vm14 = vweird.f32 %v2213_v23 }
 0x314   : > { %v1055_v29 = vadd.f32 1e-05, %v1049_v25  ;;  %vm1064_vm2 = vmor %vm1062_vm15, %vm1063_vm14  ;;  %v1095_v42 = vadd.f32 %v1093_v38, %v1091_v37 }
 0x315   : > { %v1058_v30 = vmul.f32 %v2213_v23, %v1057_v26 }
 0x316   : > { %2214 = vrsqrt.f32 %v1055_v29  ;;  %v1098_v50 = vmax.f32 %v1095_v42, 0.0  ;;  %vm1082_vm4 = vweird.f32 %v1055_v29 }
 0x317   : > { %v1059_v34 = vmul.f32 0.5, %v1058_v30 }
 0x318   : > { %v1101_v55 = vmul.f32 %v1098_v50, %v2587_v31 }
 0x319   : > { %v1060_v36 = vsub.f32 1.5, %v1059_v34 }
 0x31b   : > { %v1061_v39 = vmul.f32 %v2213_v23, %v1060_v36 }
 0x31c   : > { %v2215_v41 = vpop.eup %2214 }
 0x31d   : > { %v1065_v40 = vsel %vm1064_vm2, %v2213_v23, %v1061_v39  ;;  %v1077_v43 = vmul.f32 %v2215_v41, %v1055_v29  ;;  %vm1083_vm3 = vweird.f32 %v2215_v41 }
 0x31e   : > { %v1086_v62 = vmul.f32 %v1065_v40, %v1050_v8  ;;  %vm1084_vm5 = vmor %vm1082_vm4, %vm1083_vm3  ;;  %v2092_v40 = vld [vmem:[#allocation8 + $0x28] sm:$0xff] }
 0x31f   : > { %v1078_v44 = vmul.f32 %v2215_v41, %v1077_v43 }
 0x320   : > { %v1090_v46 = vmul.f32 %v1089_v33, %v1086_v62  ;;  %v2091_v62 = vld [vmem:[#allocation8 + $0x20] sm:$0xff] }
 0x321   : > { %v1079_v48 = vmul.f32 0.5, %v1078_v44 }
 0x322   : > { %v1094_v49 = vadd.f32 %v1093_v38, %v1090_v46 }
 0x323   : > { %v1080_v51 = vsub.f32 1.5, %v1079_v48 }
 0x324   : > { %v1097_v52 = vmax.f32 %v1094_v49, 0.0  ;;  %v2090_v49 = vld [vmem:[#allocation8 + $0x18] sm:$0xff] }
 0x325   : > { %v1081_v53 = vmul.f32 %v2215_v41, %v1080_v51 }
 0x326   : > { %v1100_v54 = vmul.f32 %v1097_v52, %v2576_v28 }
 0x327   : > { %v1085_v56 = vsel %vm1084_vm5, %v2215_v41, %v1081_v53  ;;  %v2094_v41 = vld [vmem:[#allocation8 + $0x38] sm:$0xff] }
 0x328   : > { %v1088_v57 = vmul.f32 %v1085_v56, %v1052_v24  ;;  %v1103_v58 = vpack.c.bf16 %v1101_v55, %v1100_v54  ;;  %1523 = vmatpush.bf16.msra.mxu1 %v2094_v41  ;;  %2104 = vmatpush.bf16.msra.mxu3 %v2094_v41  ;;  %v2089_v24 = vld [vmem:[#allocation8 + $0x10] sm:$0xff]  ;;  %v2088_v54 = vld [vmem:[#allocation8 + $0x8] sm:$0xff] }
 0x32a   : > { %v1092_v13 = vmul.f32 %v1089_v33, %v1088_v57  ;;  %1179 = vmatmul.bf16.vlgmr.msrb.gmra.mxu2 %v1103_v58  ;;  %1262 = vmatmul.bf16.vlgmr.msrb.gmra.mxu3 %v1103_v58  ;;  %v2087_v57 = vld [vmem:[#allocation8] sm:$0xff] }
 0x32b   : > { %1354 = vmatmul.bf16.vlgmr.msra.gmra.mxu0 %v1103_v58 }
 0x32c   : > { %v1096_v59 = vadd.f32 %v1093_v38, %v1092_v13  ;;  %1524 = vmatpush.bf16.msra.mxu1 %v2093_v47  ;;  %2105 = vmatpush.bf16.msra.mxu3 %v2093_v47 }
 0x32e   : > { %v1099_v60 = vmax.f32 %v1096_v59, 0.0 }
 0x330   : > { %v1102_v61 = vmul.f32 %v1099_v60, %v2591_v35  ;;  %1525 = vmatpush.bf16.msra.mxu1 %v2092_v40  ;;  %2106 = vmatpush.bf16.msra.mxu3 %v2092_v40 }
 0x332   : > { %v1104_v63 = vpack.c.bf16 %v1102_v61, %v1102_v61 }
 0x334   : > { %1526 = vmatpush.bf16.msra.mxu1 %v2091_v62  ;;  %2107 = vmatpush.bf16.msra.mxu3 %v2091_v62 }
 0x338   : > { %1527 = vmatpush.bf16.msra.mxu1 %v2090_v49  ;;  %2108 = vmatpush.bf16.msra.mxu3 %v2090_v49 }
 0x33a   : > { %1184 = vmatmul.bf16.gmra.mxu2 %v1104_v63  ;;  %1267 = vmatmul.bf16.gmra.mxu3 %v1104_v63 }
 0x33c   : > { %1528 = vmatpush.bf16.msra.mxu1 %v2089_v24  ;;  %2109 = vmatpush.bf16.msra.mxu3 %v2089_v24 }
 0x340   : > { %1529 = vmatpush.bf16.msra.mxu1 %v2088_v54  ;;  %2110 = vmatpush.bf16.msra.mxu3 %v2088_v54 }
 0x344   : > { %1530 = vmatpush.bf16.msra.mxu1 %v2087_v57  ;;  %2111 = vmatpush.bf16.msra.mxu3 %v2087_v57  ;;  %v2224_v57 = vld [vmem:[%s2583_s23 + $0x8] sm:$0xff] }
 0x34a   : > { %1359 = vmatmul.bf16.vlgmr.msra.gmra.mxu2 %v1104_v63 }
 0x3a8   : > { %v1355_v28 = vpop.f32.mrf.mxu0 }
 0x3a9   : > { %v1364_v12 = vrot.slane %v1355_v28, 1 }
 0x3ad   : > { %v1180_v22 = vpop.f32.mrf.mxu2  ;;  %v1263_v0 = vpop.f32.mrf.mxu3 }
 0x3ae   : > { %v1272_v7 = vrot.slane %v1263_v0, 7  ;;  %v1181_v11 = vadd.f32 %v1180_v22, %v1122_v2 }
 0x3b0   : > { %v1357_v3 = vpop.f32.mrf.mxu0 }
 0x3b1   : > { %v1365_v9 = vrot.slane %v1357_v3, 1 }
 0x3b3   : > { %v1368_v15 = vsel %vm661_vm1, %v1364_v12, %v1365_v9 }
 0x3b5   : > { %v1182_v1 = vpop.f32.mrf.mxu2  ;;  %v1265_v31 = vpop.f32.mrf.mxu3 }
 0x3b6   : > { %v1273_v19 = vrot.slane %v1265_v31, 7  ;;  %v1183_v20 = vadd.f32 %v1182_v1, %v1122_v2 }
 0x3b8   : > { %v1276_v25 = vsel %vm568_vm0, %v1272_v7, %v1273_v19 }
 0x3b9   : > { %v1279_v29 = vadd.f32 %v1276_v25, %v1183_v20  ;;  %v1442_v25 = vperm.slane %v2595_v45, 7 }
 0x3bd   : > { %v1185_v4 = vpop.f32.mrf.mxu2  ;;  %v1268_v6 = vpop.f32.mrf.mxu3 }
 0x3be   : > { %v1274_v10 = vrot.slane %v1268_v6, 7  ;;  %v1186_v21 = vadd.f32 %v1185_v4, %v1122_v2 }
 0x3c0   : > { %v1277_v35 = vsel %vm568_vm0, %v1274_v10, %v1272_v7  ;;  %v1275_v5 = vsel %vm568_vm0, %v1273_v19, %v1274_v10 }
 0x3c1   : > { %v1278_v14 = vadd.f32 %v1277_v35, %v1181_v11  ;;  %v1280_v30 = vadd.f32 %v1275_v5, %v1186_v21 }
 0x3c3   : > { %v2716_v16 = vadd.f32 %v1368_v15, %v1278_v14 }
 0x3c5   : > { %1373 = vadd.xlane.f32.xlu1 %v2716_v16  ;;  %v1187_v17 = vpop.f32.mrf.mxu2  ;;  %v1270_v18 = vpop.f32.mrf.mxu3  ;;  %v1382_v23 = vmul.f32 %v2716_v16, %v2716_v16 }
 0x3cd   : > { %1385 = vadd.xlane.f32.xlu1 %v1382_v23  ;;  %v1360_v26 = vpop.f32.mrf.mxu2 }
 0x3ce   : > { %v1366_v27 = vrot.slane %v1360_v26, 1 }
 0x3d0   : > { %v1367_v32 = vsel %vm661_vm1, %v1365_v9, %v1366_v27  ;;  %v1369_v33 = vsel %vm661_vm1, %v1366_v27, %v1364_v12 }
 0x3d1   : > { %v2729_v34 = vadd.f32 %v1367_v32, %v1279_v29  ;;  %v2731_v36 = vadd.f32 %v1369_v33, %v1280_v30  ;;  %v2202_v33 = vld [vmem:[#allocation7 + $0x8] ss:$0 sm:$0xff] }
 0x3d3   : > { %1375 = vadd.xlane.f32.xlu2 %v2729_v34  ;;  %1377 = vadd.xlane.f32.xlu0 %v2731_v36  ;;  %v1383_v38 = vmul.f32 %v2729_v34, %v2729_v34  ;;  %v1384_v39 = vmul.f32 %v2731_v36, %v2731_v36 }
 0x3d5   : > { %v1362_v37 = vpop.f32.mrf.mxu2 }
 0x3db   : > { %1387 = vadd.xlane.f32.xlu2 %v1383_v38  ;;  %1389 = vadd.xlane.f32.xlu0 %v1384_v39 }
 0x438   : > { %v1374_v8 = vpop.xlane.xlu1 %1373 }
 0x439   : > { %v1379_v43 = vmul.f32 0.03125, %v1374_v8 }
 0x43b   : > { %v1394_v44 = vmul.f32 %v1379_v43, %v1379_v43  ;;  %v1403_v18 = vsub.f32 %v2716_v16, %v1379_v43 }
 0x440   : > { %v1386_v42 = vpop.xlane.xlu1 %1385 }
 0x441   : > { %v1391_v46 = vmul.f32 0.03125, %v1386_v42 }
 0x443   : > { %v1397_v48 = vsub.f32 %v1391_v46, %v1394_v44 }
 0x445   : > { %v1400_v50 = vmax.f32 %v1397_v48, 0.0 }
 0x446   : > { %v1376_v51 = vpop.xlane.xlu2 %1375  ;;  %v1378_v52 = vpop.xlane.xlu0 %1377 }
 0x447   : > { %v1406_v53 = vadd.f32 1e-05, %v1400_v50  ;;  %v1380_v55 = vmul.f32 0.03125, %v1376_v51  ;;  %v1381_v56 = vmul.f32 0.03125, %v1378_v52  ;;  %v2222_v50 = vld [vmem:[%s2583_s23] sm:$0xff] }
 0x449   : > { %2216 = vrsqrt.f32 %v1406_v53  ;;  %v1395_v60 = vmul.f32 %v1380_v55, %v1380_v55  ;;  %v1396_v61 = vmul.f32 %v1381_v56, %v1381_v56  ;;  %vm1415_vm1 = vweird.f32 %v1406_v53 }
 0x44a   : > { %v1404_v29 = vsub.f32 %v2729_v34, %v1380_v55  ;;  %v1405_v16 = vsub.f32 %v2731_v36, %v1381_v56  ;;  %v2203_v36 = vld [vmem:[%s2787_s6] ss:$0 sm:$0xff]  ;;  %v2223_v55 = vld [vmem:[%s2583_s23 + $0x10] sm:$0xff] }
 0x44e   : > { %v1388_v58 = vpop.xlane.xlu2 %1387  ;;  %v1390_v13 = vpop.xlane.xlu0 %1389 }
 0x44f   : > { %v2217_v59 = vpop.eup %2216  ;;  %v1392_v63 = vmul.f32 0.03125, %v1388_v58  ;;  %v1393_v22 = vmul.f32 0.03125, %v1390_v13 }
 0x450   : > { %v1410_v0 = vmul.f32 %v2217_v59, %v1406_v53  ;;  %vm1416_vm0 = vweird.f32 %v2217_v59 }
 0x451   : > { %v1398_v28 = vsub.f32 %v1392_v63, %v1395_v60  ;;  %v1399_v1 = vsub.f32 %v1393_v22, %v1396_v61  ;;  %vm1417_vm6 = vmor %vm1415_vm1, %vm1416_vm0 }
 0x452   : > { %v1411_v31 = vmul.f32 %v2217_v59, %v1410_v0 }
 0x453   : > { %v1401_v2 = vmax.f32 %v1398_v28, 0.0  ;;  %v1402_v3 = vmax.f32 %v1399_v1, 0.0 }
 0x454   : > { %v1412_v4 = vmul.f32 0.5, %v1411_v31 }
 0x455   : > { %v1407_v6 = vadd.f32 1e-05, %v1401_v2  ;;  %v1408_v7 = vadd.f32 1e-05, %v1402_v3 }
 0x456   : > { %v1413_v9 = vsub.f32 1.5, %v1412_v4 }
 0x457   : > { %2218 = vrsqrt.f32 %v1407_v6  ;;  %vm1425_vm9 = vweird.f32 %v1407_v6  ;;  %vm1435_vm11 = vweird.f32 %v1408_v7 }
 0x458   : > { %2220 = vrsqrt.f32 %v1408_v7  ;;  %v1414_v10 = vmul.f32 %v2217_v59, %v1413_v9 }
 0x45a   : > { %v1418_v15 = vsel %vm1417_vm6, %v2217_v59, %v1414_v10 }
 0x45b   : > { %v1439_v21 = vmul.f32 %v1418_v15, %v1403_v18 }
 0x45d   : > { %v2219_v11 = vpop.eup %2218  ;;  %v1443_v32 = vmul.f32 %v1442_v25, %v1439_v21 }
 0x45e   : > { %v2221_v12 = vpop.eup %2220  ;;  %v1420_v35 = vmul.f32 %v2219_v11, %v1407_v6  ;;  %vm1426_vm7 = vweird.f32 %v2219_v11 }
 0x45f   : > { %v1430_v14 = vmul.f32 %v2221_v12, %v1408_v7  ;;  %vm1436_vm8 = vweird.f32 %v2221_v12  ;;  %vm1427_vm10 = vmor %vm1425_vm9, %vm1426_vm7  ;;  %v1447_v47 = vadd.f32 %v2202_v33, %v1443_v32 }
 0x460   : > { %v1421_v17 = vmul.f32 %v2219_v11, %v1420_v35  ;;  %vm1437_vm12 = vmor %vm1435_vm11, %vm1436_vm8 }
 0x461   : > { %v1431_v19 = vmul.f32 %v2221_v12, %v1430_v14  ;;  %v1450_v43 = vmax.f32 %v1447_v47, 0.0 }
 0x462   : > { %v1422_v20 = vmul.f32 0.5, %v1421_v17 }
 0x463   : > { %v1432_v23 = vmul.f32 0.5, %v1431_v19 }
 0x464   : > { %v1423_v5 = vsub.f32 1.5, %v1422_v20 }
 0x465   : > { %v1433_v26 = vsub.f32 1.5, %v1432_v23 }
 0x466   : > { %v1424_v27 = vmul.f32 %v2219_v11, %v1423_v5 }
 0x467   : > { %v1434_v30 = vmul.f32 %v2221_v12, %v1433_v26 }
 0x468   : > { %v1428_v37 = vsel %vm1427_vm10, %v2219_v11, %v1424_v27 }
 0x469   : > { %v1440_v38 = vmul.f32 %v1428_v37, %v1404_v29  ;;  %v1438_v45 = vsel %vm1437_vm12, %v2221_v12, %v1434_v30 }
 0x46a   : > { %v1441_v39 = vmul.f32 %v1438_v45, %v1405_v16 }
 0x46b   : > { %v1444_v41 = vmul.f32 %v1442_v25, %v1440_v38 }
 0x46c   : > { %v1445_v8 = vmul.f32 %v1442_v25, %v1441_v39 }
 0x46d   : > { %v1448_v40 = vadd.f32 %v2202_v33, %v1444_v41 }
 0x46e   : > { %v1449_v34 = vadd.f32 %v2202_v33, %v1445_v8 }
 0x46f   : > { %v1451_v62 = vmax.f32 %v1448_v40, 0.0 }
 0x470   : > { %v1452_v42 = vmax.f32 %v1449_v34, 0.0 }
 0x471   : > { %v1453_v44 = vpack.c.bf16 %v1451_v62, %v1450_v43 }
 0x472   : > { %v1454_v46 = vpack.c.bf16 %v1452_v42, %v1452_v42 }
 0x473   : > { %1531 = vmatmul.bf16.vlgmr.msra.gmra.mxu1 %v1453_v44 }
 0x474   : > { %1536 = vmatmul.bf16.vlgmr.msra.gmra.mxu3 %v1454_v46 }
 0x4f0   : > { %v1532_v48 = vpop.f32.mrf.mxu1 }
 0x4f1   : > { %v1533_v49 = vadd.f32 %v2203_v36, %v1532_v48 }
 0x4f3   : > { %v1541_v51 = vadd.f32 %v2222_v50, %v1533_v49 }
 0x4f5   : > { %1544 = vst [vmem:[%s355_s22] sm:$0xff] %v1541_v51 }
 0x4f7   : > { %v1537_v52 = vpop.f32.mrf.mxu3 }
 0x4f8   : > { %v1538_v53 = vadd.f32 %v2203_v36, %v1537_v52  ;;  %v1534_v24 = vpop.f32.mrf.mxu1 }
 0x4f9   : > { %v1535_v54 = vadd.f32 %v2203_v36, %v1534_v24 }
 0x4fa   : > { %v1543_v56 = vadd.f32 %v2223_v55, %v1538_v53 }
 0x4fb   : > { %v1542_v58 = vadd.f32 %v2224_v57, %v1535_v54 }
 0x4fc   : > { %1546 = vst [vmem:[%s355_s22 + $0x10] sm:$0xff] %v1543_v56 }
 0x4fd   : > { %1545 = vst [vmem:[%s355_s22 + $0x8] sm:$0xff] %v1542_v58 }
 0x4fe   : > { %2372 = shalt.err (!%p2369_p8)
}
 0x4ff   : > { %s2430_s23 = smov 128   ;;  %s2431_s29 = smov 8   ;;  %v1539_v13 = vpop.f32.mrf.mxu3 }
 0x500   : > { %2129 = dma.vmem_to_hbm [thread:$0]  (%p2510_p5), %s1561_s8, 384, %s1563_s2, %s1548_s28, %s2430_s23, %s2430_s23, %s2431_s29  }
 0x501 PF: > { %p2156_p9 = scmp.ge.s32.totalorder %s2419_s27, 2  ;;  %s1577_s14 = sand.u32 1, %s2407_s24  }
 0x502   : > { %s1578_s15 = scalar_lea.sflag [#allocation4], %s1577_s14 }
 0x503   : > { %p2145_p10 = pnand %p2156_p9, %p2514_p6 }
 0x505   : > { %p2146_p11 = pneg %p2145_p10 }
 0x507   : > { %2402 = dma.done.wait (%p2146_p11), %s1578_s15, 384  }
 0x508   : > { %2404 = vsyncadd (%p2146_p11), %s1578_s15, 4294966912  ;;  %s2800_s17 = sld [smem:[#allocation15_spill]]  ;;  %p20_p12 = scmp.ge.s32.totalorder %s2497_s30, 4  }
 0x509   : > { %s2801_s26 = sld [smem:[#allocation16_spill]]  ;;  %s2802_s24 = smov %s2411_s25 }
 0x50a   : > { %s2804_s27 = smov %s2497_s30  ;;  %22 = sbr.rel (!%p20_p12) target bundleno = 9 (0x9), region = 110 }
 0x50e   : > { %s2803_s25 = smov %s2800_s17 }
 0x50f   :  { %1584 = vsyncpa [#allocation3], 1 }
 0x510   :  { %1586 = vsyncpa [#allocation3 + $0x1], 1 }
 0x511   :  { %1587 = vsyncpa [#allocation6], 1 }
 0x512   :  { %1588 = vsyncpa [#allocation9], 1 }
 0x513   :  { %1589 = vsyncpa [#allocation4], 1 }
 0x514   :  { %1591 = vsyncpa [#allocation4 + $0x1], 1 }

</bundles_post_ra>
